<compile_context>
chip_gen: v7x
topology: tpu7x:2x2x1
jax: 0.10.0
libtpu: 0.0.40
codegen_flags: <defaults>
</compile_context>

<pallas_src>
import functools

import jax
import jax.numpy as jnp
from jax import lax
from jax.experimental import pallas as pl
from jax.experimental.pallas import tpu as pltpu


def _pose_classifier_kernel(x_ref,        # (T*Bp, D)  time-major, row = t*Bp + b
                            wih0_ref,     # (D, 4H)   gate cols (i,f,o,g)
                            b0_ref,       # (1, 4H)   b_ih0 + b_hh0, permuted
                            whh0_ref,     # (H, 4H)
                            wih1_ref,     # (H, 4H)
                            whh1_ref,     # (H, 4H)
                            b1_ref,       # (1, 4H)
                            fc1w_ref, fc1b_ref, fc2w_ref, fc2b_ref,
                            out_ref,      # (Bp, C)
                            xg_ref,       # VMEM scratch (T*Bp, 4H)
                            *, Bp, T, H):
    f32 = jnp.float32
    H3 = 3 * H
    H4 = 4 * H

    # ---- hoisted layer-0 input projection over ALL timesteps (one matmul),
    # bias folded in, stored to scratch so the unrolled loop only holds views.
    xg_ref[...] = (jnp.dot(x_ref[...], wih0_ref[...], preferred_element_type=f32)
                   + b0_ref[...])

    whh0 = whh0_ref[...]                                    # (H, 4H)
    wih1 = wih1_ref[...]                                    # (H, 4H)
    whh1 = whh1_ref[...]                                    # (H, 4H)
    b1 = jnp.broadcast_to(b1_ref[...], (Bp, H4))            # hoisted broadcast

    def gate_act(gates):
        # gates columns are (i, f, o, g).  Sigmoid on the first 3H columns via
        # the tanh form (single EUP pass), tanh on the last H only.
        sig = 0.5 * jnp.tanh(0.5 * gates[:, :H3]) + 0.5     # (Bp, 3H)
        tnh = jnp.tanh(gates[:, H3:])                       # (Bp, H)
        return (sig[:, 0:H],        # i
                sig[:, H:2 * H],    # f
                sig[:, 2 * H:H3],   # o
                tnh)                # g

    h0 = jnp.zeros((Bp, H), f32)
    c0 = jnp.zeros((Bp, H), f32)
    h1 = jnp.zeros((Bp, H), f32)
    c1 = jnp.zeros((Bp, H), f32)

    # Statically unrolled recurrence (T small & static -> static, tile-aligned
    # slices, no per-step grid/DMA overhead, full scheduler visibility).
    for t in range(T):
        # layer 0: input projection already hoisted; only the recurrent matmul.
        g0 = xg_ref[t * Bp:(t + 1) * Bp, :] + jnp.dot(
            h0, whh0, preferred_element_type=f32)
        i0, f0, o0, gg0 = gate_act(g0)
        c0 = f0 * c0 + i0 * gg0
        h0 = o0 * jnp.tanh(c0)

        # layer 1: two accumulated dots instead of a lane-axis concat + one dot.
        g1 = (jnp.dot(h0, wih1, preferred_element_type=f32)
              + jnp.dot(h1, whh1, preferred_element_type=f32) + b1)
        i1, f1, o1, gg1 = gate_act(g1)
        c1 = f1 * c1 + i1 * gg1
        h1 = o1 * jnp.tanh(c1)

    # ---- classifier head on the last timestep of layer 1 ----
    z = jnp.dot(h1, fc1w_ref[...], preferred_element_type=f32) + fc1b_ref[...]
    z = jnp.maximum(z, 0.0)                                  # relu
    # dropout(p=0.5): identity in eval mode.
    out = jnp.dot(z, fc2w_ref[...], preferred_element_type=f32) + fc2b_ref[...]
    out_ref[...] = out.astype(out_ref.dtype)


def pose_classifier_forward(x_btd, params):
    """x_btd: (B, T, D) float32, batch-first like the PyTorch module."""
    B, T, D = x_btd.shape
    H = params["whh0"].shape[0]
    C = params["fc2w"].shape[1]

    # Pad batch to the f32 sublane multiple so every per-step slice of the
    # hoisted projection is (8,128)-tile aligned. Padded rows are zero and
    # dropped at the end (LSTM state is per-row, no cross-row mixing).
    Bp = max(8, ((B + 7) // 8) * 8)

    # Permute gate columns from PyTorch order (i,f,g,o) to (i,f,o,g) so the
    # sigmoid gates are contiguous.  Applied identically to BOTH layers'
    # weights and (folded) biases.
    def perm_gates(w):
        return jnp.concatenate(
            [w[..., 0:H], w[..., H:2 * H], w[..., 3 * H:4 * H],
             w[..., 2 * H:3 * H]], axis=-1)

    wih0 = perm_gates(params["wih0"])
    whh0 = perm_gates(params["whh0"])
    b0 = perm_gates(params["b0"])
    wih1 = perm_gates(params["wih1"])
    whh1 = perm_gates(params["whh1"])
    b1 = perm_gates(params["b1"])

    # Time-major flatten with zero batch padding: row t*Bp + b.
    x_tbd = jnp.transpose(x_btd, (1, 0, 2))                  # (T, B, D)
    x_tbd = jnp.pad(x_tbd, ((0, 0), (0, Bp - B), (0, 0)))    # (T, Bp, D)
    x2d = x_tbd.reshape(T * Bp, D)

    kernel = functools.partial(_pose_classifier_kernel, Bp=Bp, T=T, H=H)
    vmem = pl.BlockSpec(memory_space=pltpu.MemorySpace.VMEM)

    out = pl.pallas_call(
        kernel,
        out_shape=jax.ShapeDtypeStruct((Bp, C), jnp.float32),
        in_specs=[vmem] * 11,
        out_specs=vmem,
        scratch_shapes=[pltpu.VMEM((T * Bp, 4 * H), jnp.float32)],
        compiler_params=pltpu.CompilerParams(vmem_limit_bytes=32 << 20),
    )(x2d, wih0, b0, whh0, wih1, whh1, b1,
      params["fc1w"], params["fc1b"], params["fc2w"], params["fc2b"])

    return out[:B]


def _reference_forward(x_btd, params):
    """Pure-JAX reference mirroring torch.nn.LSTM + fc head (eval mode)."""
    B, T, D = x_btd.shape
    H = params["whh0"].shape[0]

    def cell(x_in, h, c, wih, whh, b):
        g = x_in @ wih + h @ whh + b
        i = jax.nn.sigmoid(g[:, 0 * H:1 * H])
        f = jax.nn.sigmoid(g[:, 1 * H:2 * H])
        gg = jnp.tanh(g[:, 2 * H:3 * H])
        o = jax.nn.sigmoid(g[:, 3 * H:4 * H])
        c_new = f * c + i * gg
        h_new = o * jnp.tanh(c_new)
        return h_new, c_new

    def step(carry, x_t):
        h0, c0, h1, c1 = carry
        h0, c0 = cell(x_t, h0, c0, params["wih0"], params["whh0"], params["b0"])
        h1, c1 = cell(h0, h1, c1, params["wih1"], params["whh1"], params["b1"])
        return (h0, c0, h1, c1), h1

    zeros = jnp.zeros((B, H), jnp.float32)
    (_, _, h1, _), _ = lax.scan(step, (zeros, zeros, zeros, zeros),
                                jnp.transpose(x_btd, (1, 0, 2)))
    z = jnp.maximum(h1 @ params["fc1w"] + params["fc1b"], 0.0)
    return z @ params["fc2w"] + params["fc2b"]


def _make_params(key, input_size, hidden_size, num_classes):
    ks = jax.random.split(key, 12)
    H, D, C = hidden_size, input_size, num_classes
    scale = 0.1

    def rnd(k, shape):
        return (scale * jax.random.normal(k, shape)).astype(jnp.float32)

    # stored pre-transposed: (in_features, out_features), PyTorch gate order.
    return {
        "wih0": rnd(ks[0], (D, 4 * H)),
        "whh0": rnd(ks[1], (H, 4 * H)),
        "b0":   rnd(ks[2], (1, 4 * H)) + rnd(ks[3], (1, 4 * H)),  # b_ih + b_hh
        "wih1": rnd(ks[4], (H, 4 * H)),
        "whh1": rnd(ks[5], (H, 4 * H)),
        "b1":   rnd(ks[6], (1, 4 * H)) + rnd(ks[7], (1, 4 * H)),
        "fc1w": rnd(ks[8], (H, H)),
        "fc1b": rnd(ks[9], (1, H)),
        "fc2w": rnd(ks[10], (H, C)),
        "fc2b": rnd(ks[11], (1, C)),
    }


if __name__ == "__main__":
    B, T, D, H, C = 2, 8, 16, 32, 8
    key = jax.random.PRNGKey(0)
    kx, kp = jax.random.split(key)

    x = jax.random.normal(kx, (B, T, D), dtype=jnp.float32)
    params = _make_params(kp, D, H, C)

    out = pose_classifier_forward(x, params)
    out = jax.block_until_ready(out)

    with jax.default_matmul_precision("highest"):
        ref = _reference_forward(x, params)

    assert out.shape == (B, C)
    err = float(jnp.max(jnp.abs(out - ref)))
    assert err < 1e-4, f"mismatch vs pure-JAX reference: {err}"

    print("KERNEL_OK")
</pallas_src>

<mosaic_0001>
module attributes {stable_mosaic.version = 11 : i64} {
  func.func @_pose_classifier_kernel(%arg0: memref<64x16xf32, #tpu.memory_space<vmem>>, %arg1: memref<16x128xf32, #tpu.memory_space<vmem>>, %arg2: memref<1x128xf32, #tpu.memory_space<vmem>>, %arg3: memref<32x128xf32, #tpu.memory_space<vmem>>, %arg4: memref<32x128xf32, #tpu.memory_space<vmem>>, %arg5: memref<32x128xf32, #tpu.memory_space<vmem>>, %arg6: memref<1x128xf32, #tpu.memory_space<vmem>>, %arg7: memref<32x32xf32, #tpu.memory_space<vmem>>, %arg8: memref<1x32xf32, #tpu.memory_space<vmem>>, %arg9: memref<32x8xf32, #tpu.memory_space<vmem>>, %arg10: memref<1x8xf32, #tpu.memory_space<vmem>>, %arg11: memref<8x8xf32, #tpu.memory_space<vmem>>, %arg12: memref<64x128xf32, #tpu.memory_space<vmem>>) attributes {dimension_semantics = [], scalar_prefetch = 0 : i64, scratch_operands = 1 : i64, tpu.core_type = #tpu.core_type<tc>} {
    %c0 = arith.constant 0 : index
    %c0_0 = arith.constant 0 : index
    %0 = vector.load %arg0[%c0, %c0_0] : memref<64x16xf32, #tpu.memory_space<vmem>>, vector<64x16xf32>
    %c0_1 = arith.constant 0 : index
    %c0_2 = arith.constant 0 : index
    %1 = vector.load %arg1[%c0_1, %c0_2] : memref<16x128xf32, #tpu.memory_space<vmem>>, vector<16x128xf32>
    %cst = arith.constant dense<0.000000e+00> : vector<64x128xf32>
    %2 = tpu.matmul %0, %1, %cst {dimension_numbers = #tpu.dot_dimension_numbers<[1], [0], [0], [1], [0, 0, 1, 1], [], []>} : vector<64x16xf32>, vector<16x128xf32>, vector<64x128xf32> -> vector<64x128xf32>
    %c0_3 = arith.constant 0 : index
    %c0_4 = arith.constant 0 : index
    %3 = vector.load %arg2[%c0_3, %c0_4] : memref<1x128xf32, #tpu.memory_space<vmem>>, vector<1x128xf32>
    %4 = vector.broadcast %3 : vector<1x128xf32> to vector<64x128xf32>
    %5 = arith.addf %2, %4 : vector<64x128xf32>
    %c0_5 = arith.constant 0 : index
    %c0_6 = arith.constant 0 : index
    %6 = vector.load %arg12[%c0_5, %c0_6] : memref<64x128xf32, #tpu.memory_space<vmem>>, vector<64x128xf32>
    tpu.vector_store %arg12[%c0_5, %c0_6], %5 {strides = array<i32>} : memref<64x128xf32, #tpu.memory_space<vmem>>, vector<64x128xf32>,
    %c0_7 = arith.constant 0 : index
    %c0_8 = arith.constant 0 : index
    %7 = vector.load %arg3[%c0_7, %c0_8] : memref<32x128xf32, #tpu.memory_space<vmem>>, vector<32x128xf32>
    %c0_9 = arith.constant 0 : index
    %c0_10 = arith.constant 0 : index
    %8 = vector.load %arg4[%c0_9, %c0_10] : memref<32x128xf32, #tpu.memory_space<vmem>>, vector<32x128xf32>
    %c0_11 = arith.constant 0 : index
    %c0_12 = arith.constant 0 : index
    %9 = vector.load %arg5[%c0_11, %c0_12] : memref<32x128xf32, #tpu.memory_space<vmem>>, vector<32x128xf32>
    %c0_13 = arith.constant 0 : index
    %c0_14 = arith.constant 0 : index
    %10 = vector.load %arg6[%c0_13, %c0_14] : memref<1x128xf32, #tpu.memory_space<vmem>>, vector<1x128xf32>
    %11 = vector.shape_cast %10 : vector<1x128xf32> to vector<1x128xf32>
    %12 = vector.broadcast %11 : vector<1x128xf32> to vector<8x128xf32>
    %cst_15 = arith.constant 0.000000e+00 : f32
    %13 = vector.broadcast %cst_15 : f32 to vector<8x32xf32>
    %cst_16 = arith.constant 0.000000e+00 : f32
    %14 = vector.broadcast %cst_16 : f32 to vector<8x32xf32>
    %cst_17 = arith.constant 0.000000e+00 : f32
    %15 = vector.broadcast %cst_17 : f32 to vector<8x32xf32>
    %cst_18 = arith.constant 0.000000e+00 : f32
    %16 = vector.broadcast %cst_18 : f32 to vector<8x32xf32>
    %c0_19 = arith.constant 0 : index
    %c0_20 = arith.constant 0 : index
    %17 = vector.load %arg12[%c0_19, %c0_20] : memref<64x128xf32, #tpu.memory_space<vmem>>, vector<8x128xf32>
    %cst_21 = arith.constant dense<0.000000e+00> : vector<8x128xf32>
    %18 = tpu.matmul %13, %7, %cst_21 {dimension_numbers = #tpu.dot_dimension_numbers<[1], [0], [0], [1], [0, 0, 1, 1], [], []>} : vector<8x32xf32>, vector<32x128xf32>, vector<8x128xf32> -> vector<8x128xf32>
    %19 = arith.addf %17, %18 : vector<8x128xf32>
    %20 = vector.extract_strided_slice %19 {offsets = [0, 0], sizes = [8, 96], strides = [1, 1]} : vector<8x128xf32> to vector<8x96xf32>
    %cst_22 = arith.constant 5.000000e-01 : f32
    %21 = vector.broadcast %cst_22 : f32 to vector<8x96xf32>
    %22 = arith.mulf %21, %20 : vector<8x96xf32>
    %23 = math.tanh %22 : vector<8x96xf32>
    %cst_23 = arith.constant 5.000000e-01 : f32
    %24 = vector.broadcast %cst_23 : f32 to vector<8x96xf32>
    %25 = arith.mulf %24, %23 : vector<8x96xf32>
    %cst_24 = arith.constant 5.000000e-01 : f32
    %26 = vector.broadcast %cst_24 : f32 to vector<8x96xf32>
    %27 = arith.addf %25, %26 : vector<8x96xf32>
    %28 = vector.extract_strided_slice %19 {offsets = [0, 96], sizes = [8, 32], strides = [1, 1]} : vector<8x128xf32> to vector<8x32xf32>
    %29 = math.tanh %28 : vector<8x32xf32>
    %30 = vector.extract_strided_slice %27 {offsets = [0, 0], sizes = [8, 32], strides = [1, 1]} : vector<8x96xf32> to vector<8x32xf32>
    %31 = vector.extract_strided_slice %27 {offsets = [0, 32], sizes = [8, 32], strides = [1, 1]} : vector<8x96xf32> to vector<8x32xf32>
    %32 = vector.extract_strided_slice %27 {offsets = [0, 64], sizes = [8, 32], strides = [1, 1]} : vector<8x96xf32> to vector<8x32xf32>
    %33 = arith.mulf %31, %14 : vector<8x32xf32>
    %34 = arith.mulf %30, %29 : vector<8x32xf32>
    %35 = arith.addf %33, %34 : vector<8x32xf32>
    %36 = math.tanh %35 : vector<8x32xf32>
    %37 = arith.mulf %32, %36 : vector<8x32xf32>
    %cst_25 = arith.constant dense<0.000000e+00> : vector<8x128xf32>
    %38 = tpu.matmul %37, %8, %cst_25 {dimension_numbers = #tpu.dot_dimension_numbers<[1], [0], [0], [1], [0, 0, 1, 1], [], []>} : vector<8x32xf32>, vector<32x128xf32>, vector<8x128xf32> -> vector<8x128xf32>
    %cst_26 = arith.constant dense<0.000000e+00> : vector<8x128xf32>
    %39 = tpu.matmul %15, %9, %cst_26 {dimension_numbers = #tpu.dot_dimension_numbers<[1], [0], [0], [1], [0, 0, 1, 1], [], []>} : vector<8x32xf32>, vector<32x128xf32>, vector<8x128xf32> -> vector<8x128xf32>
    %40 = arith.addf %38, %39 : vector<8x128xf32>
    %41 = arith.addf %40, %12 : vector<8x128xf32>
    %42 = vector.extract_strided_slice %41 {offsets = [0, 0], sizes = [8, 96], strides = [1, 1]} : vector<8x128xf32> to vector<8x96xf32>
    %cst_27 = arith.constant 5.000000e-01 : f32
    %43 = vector.broadcast %cst_27 : f32 to vector<8x96xf32>
    %44 = arith.mulf %43, %42 : vector<8x96xf32>
    %45 = math.tanh %44 : vector<8x96xf32>
    %cst_28 = arith.constant 5.000000e-01 : f32
    %46 = vector.broadcast %cst_28 : f32 to vector<8x96xf32>
    %47 = arith.mulf %46, %45 : vector<8x96xf32>
    %cst_29 = arith.constant 5.000000e-01 : f32
    %48 = vector.broadcast %cst_29 : f32 to vector<8x96xf32>
    %49 = arith.addf %47, %48 : vector<8x96xf32>
    %50 = vector.extract_strided_slice %41 {offsets = [0, 96], sizes = [8, 32], strides = [1, 1]} : vector<8x128xf32> to vector<8x32xf32>
    %51 = math.tanh %50 : vector<8x32xf32>
    %52 = vector.extract_strided_slice %49 {offsets = [0, 0], sizes = [8, 32], strides = [1, 1]} : vector<8x96xf32> to vector<8x32xf32>
    %53 = vector.extract_strided_slice %49 {offsets = [0, 32], sizes = [8, 32], strides = [1, 1]} : vector<8x96xf32> to vector<8x32xf32>
    %54 = vector.extract_strided_slice %49 {offsets = [0, 64], sizes = [8, 32], strides = [1, 1]} : vector<8x96xf32> to vector<8x32xf32>
    %55 = arith.mulf %53, %16 : vector<8x32xf32>
    %56 = arith.mulf %52, %51 : vector<8x32xf32>
    %57 = arith.addf %55, %56 : vector<8x32xf32>
    %58 = math.tanh %57 : vector<8x32xf32>
    %59 = arith.mulf %54, %58 : vector<8x32xf32>
    %c8 = arith.constant 8 : index
    %c0_30 = arith.constant 0 : index
    %60 = vector.load %arg12[%c8, %c0_30] : memref<64x128xf32, #tpu.memory_space<vmem>>, vector<8x128xf32>
    %cst_31 = arith.constant dense<0.000000e+00> : vector<8x128xf32>
    %61 = tpu.matmul %37, %7, %cst_31 {dimension_numbers = #tpu.dot_dimension_numbers<[1], [0], [0], [1], [0, 0, 1, 1], [], []>} : vector<8x32xf32>, vector<32x128xf32>, vector<8x128xf32> -> vector<8x128xf32>
    %62 = arith.addf %60, %61 : vector<8x128xf32>
    %63 = vector.extract_strided_slice %62 {offsets = [0, 0], sizes = [8, 96], strides = [1, 1]} : vector<8x128xf32> to vector<8x96xf32>
    %cst_32 = arith.constant 5.000000e-01 : f32
    %64 = vector.broadcast %cst_32 : f32 to vector<8x96xf32>
    %65 = arith.mulf %64, %63 : vector<8x96xf32>
    %66 = math.tanh %65 : vector<8x96xf32>
    %cst_33 = arith.constant 5.000000e-01 : f32
    %67 = vector.broadcast %cst_33 : f32 to vector<8x96xf32>
    %68 = arith.mulf %67, %66 : vector<8x96xf32>
    %cst_34 = arith.constant 5.000000e-01 : f32
    %69 = vector.broadcast %cst_34 : f32 to vector<8x96xf32>
    %70 = arith.addf %68, %69 : vector<8x96xf32>
    %71 = vector.extract_strided_slice %62 {offsets = [0, 96], sizes = [8, 32], strides = [1, 1]} : vector<8x128xf32> to vector<8x32xf32>
    %72 = math.tanh %71 : vector<8x32xf32>
    %73 = vector.extract_strided_slice %70 {offsets = [0, 0], sizes = [8, 32], strides = [1, 1]} : vector<8x96xf32> to vector<8x32xf32>
    %74 = vector.extract_strided_slice %70 {offsets = [0, 32], sizes = [8, 32], strides = [1, 1]} : vector<8x96xf32> to vector<8x32xf32>
    %75 = vector.extract_strided_slice %70 {offsets = [0, 64], sizes = [8, 32], strides = [1, 1]} : vector<8x96xf32> to vector<8x32xf32>
    %76 = arith.mulf %74, %35 : vector<8x32xf32>
    %77 = arith.mulf %73, %72 : vector<8x32xf32>
    %78 = arith.addf %76, %77 : vector<8x32xf32>
    %79 = math.tanh %78 : vector<8x32xf32>
    %80 = arith.mulf %75, %79 : vector<8x32xf32>
    %cst_35 = arith.constant dense<0.000000e+00> : vector<8x128xf32>
    %81 = tpu.matmul %80, %8, %cst_35 {dimension_numbers = #tpu.dot_dimension_numbers<[1], [0], [0], [1], [0, 0, 1, 1], [], []>} : vector<8x32xf32>, vector<32x128xf32>, vector<8x128xf32> -> vector<8x128xf32>
    %cst_36 = arith.constant dense<0.000000e+00> : vector<8x128xf32>
    %82 = tpu.matmul %59, %9, %cst_36 {dimension_numbers = #tpu.dot_dimension_numbers<[1], [0], [0], [1], [0, 0, 1, 1], [], []>} : vector<8x32xf32>, vector<32x128xf32>, vector<8x128xf32> -> vector<8x128xf32>
    %83 = arith.addf %81, %82 : vector<8x128xf32>
    %84 = arith.addf %83, %12 : vector<8x128xf32>
    %85 = vector.extract_strided_slice %84 {offsets = [0, 0], sizes = [8, 96], strides = [1, 1]} : vector<8x128xf32> to vector<8x96xf32>
    %cst_37 = arith.constant 5.000000e-01 : f32
    %86 = vector.broadcast %cst_37 : f32 to vector<8x96xf32>
    %87 = arith.mulf %86, %85 : vector<8x96xf32>
    %88 = math.tanh %87 : vector<8x96xf32>
    %cst_38 = arith.constant 5.000000e-01 : f32
    %89 = vector.broadcast %cst_38 : f32 to vector<8x96xf32>
    %90 = arith.mulf %89, %88 : vector<8x96xf32>
    %cst_39 = arith.constant 5.000000e-01 : f32
    %91 = vector.broadcast %cst_39 : f32 to vector<8x96xf32>
    %92 = arith.addf %90, %91 : vector<8x96xf32>
    %93 = vector.extract_strided_slice %84 {offsets = [0, 96], sizes = [8, 32], strides = [1, 1]} : vector<8x128xf32> to vector<8x32xf32>
    %94 = math.tanh %93 : vector<8x32xf32>
    %95 = vector.extract_strided_slice %92 {offsets = [0, 0], sizes = [8, 32], strides = [1, 1]} : vector<8x96xf32> to vector<8x32xf32>
    %96 = vector.extract_strided_slice %92 {offsets = [0, 32], sizes = [8, 32], strides = [1, 1]} : vector<8x96xf32> to vector<8x32xf32>
    %97 = vector.extract_strided_slice %92 {offsets = [0, 64], sizes = [8, 32], strides = [1, 1]} : vector<8x96xf32> to vector<8x32xf32>
    %98 = arith.mulf %96, %57 : vector<8x32xf32>
    %99 = arith.mulf %95, %94 : vector<8x32xf32>
    %100 = arith.addf %98, %99 : vector<8x32xf32>
    %101 = math.tanh %100 : vector<8x32xf32>
    %102 = arith.mulf %97, %101 : vector<8x32xf32>
    %c16 = arith.constant 16 : index
    %c0_40 = arith.constant 0 : index
    %103 = vector.load %arg12[%c16, %c0_40] : memref<64x128xf32, #tpu.memory_space<vmem>>, vector<8x128xf32>
    %cst_41 = arith.constant dense<0.000000e+00> : vector<8x128xf32>
    %104 = tpu.matmul %80, %7, %cst_41 {dimension_numbers = #tpu.dot_dimension_numbers<[1], [0], [0], [1], [0, 0, 1, 1], [], []>} : vector<8x32xf32>, vector<32x128xf32>, vector<8x128xf32> -> vector<8x128xf32>
    %105 = arith.addf %103, %104 : vector<8x128xf32>
    %106 = vector.extract_strided_slice %105 {offsets = [0, 0], sizes = [8, 96], strides = [1, 1]} : vector<8x128xf32> to vector<8x96xf32>
    %cst_42 = arith.constant 5.000000e-01 : f32
    %107 = vector.broadcast %cst_42 : f32 to vector<8x96xf32>
    %108 = arith.mulf %107, %106 : vector<8x96xf32>
    %109 = math.tanh %108 : vector<8x96xf32>
    %cst_43 = arith.constant 5.000000e-01 : f32
    %110 = vector.broadcast %cst_43 : f32 to vector<8x96xf32>
    %111 = arith.mulf %110, %109 : vector<8x96xf32>
    %cst_44 = arith.constant 5.000000e-01 : f32
    %112 = vector.broadcast %cst_44 : f32 to vector<8x96xf32>
    %113 = arith.addf %111, %112 : vector<8x96xf32>
    %114 = vector.extract_strided_slice %105 {offsets = [0, 96], sizes = [8, 32], strides = [1, 1]} : vector<8x128xf32> to vector<8x32xf32>
    %115 = math.tanh %114 : vector<8x32xf32>
    %116 = vector.extract_strided_slice %113 {offsets = [0, 0], sizes = [8, 32], strides = [1, 1]} : vector<8x96xf32> to vector<8x32xf32>
    %117 = vector.extract_strided_slice %113 {offsets = [0, 32], sizes = [8, 32], strides = [1, 1]} : vector<8x96xf32> to vector<8x32xf32>
    %118 = vector.extract_strided_slice %113 {offsets = [0, 64], sizes = [8, 32], strides = [1, 1]} : vector<8x96xf32> to vector<8x32xf32>
    %119 = arith.mulf %117, %78 : vector<8x32xf32>
    %120 = arith.mulf %116, %115 : vector<8x32xf32>
    %121 = arith.addf %119, %120 : vector<8x32xf32>
    %122 = math.tanh %121 : vector<8x32xf32>
    %123 = arith.mulf %118, %122 : vector<8x32xf32>
    %cst_45 = arith.constant dense<0.000000e+00> : vector<8x128xf32>
    %124 = tpu.matmul %123, %8, %cst_45 {dimension_numbers = #tpu.dot_dimension_numbers<[1], [0], [0], [1], [0, 0, 1, 1], [], []>} : vector<8x32xf32>, vector<32x128xf32>, vector<8x128xf32> -> vector<8x128xf32>
    %cst_46 = arith.constant dense<0.000000e+00> : vector<8x128xf32>
    %125 = tpu.matmul %102, %9, %cst_46 {dimension_numbers = #tpu.dot_dimension_numbers<[1], [0], [0], [1], [0, 0, 1, 1], [], []>} : vector<8x32xf32>, vector<32x128xf32>, vector<8x128xf32> -> vector<8x128xf32>
    %126 = arith.addf %124, %125 : vector<8x128xf32>
    %127 = arith.addf %126, %12 : vector<8x128xf32>
    %128 = vector.extract_strided_slice %127 {offsets = [0, 0], sizes = [8, 96], strides = [1, 1]} : vector<8x128xf32> to vector<8x96xf32>
    %cst_47 = arith.constant 5.000000e-01 : f32
    %129 = vector.broadcast %cst_47 : f32 to vector<8x96xf32>
    %130 = arith.mulf %129, %128 : vector<8x96xf32>
    %131 = math.tanh %130 : vector<8x96xf32>
    %cst_48 = arith.constant 5.000000e-01 : f32
    %132 = vector.broadcast %cst_48 : f32 to vector<8x96xf32>
    %133 = arith.mulf %132, %131 : vector<8x96xf32>
    %cst_49 = arith.constant 5.000000e-01 : f32
    %134 = vector.broadcast %cst_49 : f32 to vector<8x96xf32>
    %135 = arith.addf %133, %134 : vector<8x96xf32>
    %136 = vector.extract_strided_slice %127 {offsets = [0, 96], sizes = [8, 32], strides = [1, 1]} : vector<8x128xf32> to vector<8x32xf32>
    %137 = math.tanh %136 : vector<8x32xf32>
    %138 = vector.extract_strided_slice %135 {offsets = [0, 0], sizes = [8, 32], strides = [1, 1]} : vector<8x96xf32> to vector<8x32xf32>
    %139 = vector.extract_strided_slice %135 {offsets = [0, 32], sizes = [8, 32], strides = [1, 1]} : vector<8x96xf32> to vector<8x32xf32>
    %140 = vector.extract_strided_slice %135 {offsets = [0, 64], sizes = [8, 32], strides = [1, 1]} : vector<8x96xf32> to vector<8x32xf32>
    %141 = arith.mulf %139, %100 : vector<8x32xf32>
    %142 = arith.mulf %138, %137 : vector<8x32xf32>
    %143 = arith.addf %141, %142 : vector<8x32xf32>
    %144 = math.tanh %143 : vector<8x32xf32>
    %145 = arith.mulf %140, %144 : vector<8x32xf32>
    %c24 = arith.constant 24 : index
    %c0_50 = arith.constant 0 : index
    %146 = vector.load %arg12[%c24, %c0_50] : memref<64x128xf32, #tpu.memory_space<vmem>>, vector<8x128xf32>
    %cst_51 = arith.constant dense<0.000000e+00> : vector<8x128xf32>
    %147 = tpu.matmul %123, %7, %cst_51 {dimension_numbers = #tpu.dot_dimension_numbers<[1], [0], [0], [1], [0, 0, 1, 1], [], []>} : vector<8x32xf32>, vector<32x128xf32>, vector<8x128xf32> -> vector<8x128xf32>
    %148 = arith.addf %146, %147 : vector<8x128xf32>
    %149 = vector.extract_strided_slice %148 {offsets = [0, 0], sizes = [8, 96], strides = [1, 1]} : vector<8x128xf32> to vector<8x96xf32>
    %cst_52 = arith.constant 5.000000e-01 : f32
    %150 = vector.broadcast %cst_52 : f32 to vector<8x96xf32>
    %151 = arith.mulf %150, %149 : vector<8x96xf32>
    %152 = math.tanh %151 : vector<8x96xf32>
    %cst_53 = arith.constant 5.000000e-01 : f32
    %153 = vector.broadcast %cst_53 : f32 to vector<8x96xf32>
    %154 = arith.mulf %153, %152 : vector<8x96xf32>
    %cst_54 = arith.constant 5.000000e-01 : f32
    %155 = vector.broadcast %cst_54 : f32 to vector<8x96xf32>
    %156 = arith.addf %154, %155 : vector<8x96xf32>
    %157 = vector.extract_strided_slice %148 {offsets = [0, 96], sizes = [8, 32], strides = [1, 1]} : vector<8x128xf32> to vector<8x32xf32>
    %158 = math.tanh %157 : vector<8x32xf32>
    %159 = vector.extract_strided_slice %156 {offsets = [0, 0], sizes = [8, 32], strides = [1, 1]} : vector<8x96xf32> to vector<8x32xf32>
    %160 = vector.extract_strided_slice %156 {offsets = [0, 32], sizes = [8, 32], strides = [1, 1]} : vector<8x96xf32> to vector<8x32xf32>
    %161 = vector.extract_strided_slice %156 {offsets = [0, 64], sizes = [8, 32], strides = [1, 1]} : vector<8x96xf32> to vector<8x32xf32>
    %162 = arith.mulf %160, %121 : vector<8x32xf32>
    %163 = arith.mulf %159, %158 : vector<8x32xf32>
    %164 = arith.addf %162, %163 : vector<8x32xf32>
    %165 = math.tanh %164 : vector<8x32xf32>
    %166 = arith.mulf %161, %165 : vector<8x32xf32>
    %cst_55 = arith.constant dense<0.000000e+00> : vector<8x128xf32>
    %167 = tpu.matmul %166, %8, %cst_55 {dimension_numbers = #tpu.dot_dimension_numbers<[1], [0], [0], [1], [0, 0, 1, 1], [], []>} : vector<8x32xf32>, vector<32x128xf32>, vector<8x128xf32> -> vector<8x128xf32>
    %cst_56 = arith.constant dense<0.000000e+00> : vector<8x128xf32>
    %168 = tpu.matmul %145, %9, %cst_56 {dimension_numbers = #tpu.dot_dimension_numbers<[1], [0], [0], [1], [0, 0, 1, 1], [], []>} : vector<8x32xf32>, vector<32x128xf32>, vector<8x128xf32> -> vector<8x128xf32>
    %169 = arith.addf %167, %168 : vector<8x128xf32>
    %170 = arith.addf %169, %12 : vector<8x128xf32>
    %171 = vector.extract_strided_slice %170 {offsets = [0, 0], sizes = [8, 96], strides = [1, 1]} : vector<8x128xf32> to vector<8x96xf32>
    %cst_57 = arith.constant 5.000000e-01 : f32
    %172 = vector.broadcast %cst_57 : f32 to vector<8x96xf32>
    %173 = arith.mulf %172, %171 : vector<8x96xf32>
    %174 = math.tanh %173 : vector<8x96xf32>
    %cst_58 = arith.constant 5.000000e-01 : f32
    %175 = vector.broadcast %cst_58 : f32 to vector<8x96xf32>
    %176 = arith.mulf %175, %174 : vector<8x96xf32>
    %cst_59 = arith.constant 5.000000e-01 : f32
    %177 = vector.broadcast %cst_59 : f32 to vector<8x96xf32>
    %178 = arith.addf %176, %177 : vector<8x96xf32>
    %179 = vector.extract_strided_slice %170 {offsets = [0, 96], sizes = [8, 32], strides = [1, 1]} : vector<8x128xf32> to vector<8x32xf32>
    %180 = math.tanh %179 : vector<8x32xf32>
    %181 = vector.extract_strided_slice %178 {offsets = [0, 0], sizes = [8, 32], strides = [1, 1]} : vector<8x96xf32> to vector<8x32xf32>
    %182 = vector.extract_strided_slice %178 {offsets = [0, 32], sizes = [8, 32], strides = [1, 1]} : vector<8x96xf32> to vector<8x32xf32>
    %183 = vector.extract_strided_slice %178 {offsets = [0, 64], sizes = [8, 32], strides = [1, 1]} : vector<8x96xf32> to vector<8x32xf32>
    %184 = arith.mulf %182, %143 : vector<8x32xf32>
    %185 = arith.mulf %181, %180 : vector<8x32xf32>
    %186 = arith.addf %184, %185 : vector<8x32xf32>
    %187 = math.tanh %186 : vector<8x32xf32>
    %188 = arith.mulf %183, %187 : vector<8x32xf32>
    %c32 = arith.constant 32 : index
    %c0_60 = arith.constant 0 : index
    %189 = vector.load %arg12[%c32, %c0_60] : memref<64x128xf32, #tpu.memory_space<vmem>>, vector<8x128xf32>
    %cst_61 = arith.constant dense<0.000000e+00> : vector<8x128xf32>
    %190 = tpu.matmul %166, %7, %cst_61 {dimension_numbers = #tpu.dot_dimension_numbers<[1], [0], [0], [1], [0, 0, 1, 1], [], []>} : vector<8x32xf32>, vector<32x128xf32>, vector<8x128xf32> -> vector<8x128xf32>
    %191 = arith.addf %189, %190 : vector<8x128xf32>
    %192 = vector.extract_strided_slice %191 {offsets = [0, 0], sizes = [8, 96], strides = [1, 1]} : vector<8x128xf32> to vector<8x96xf32>
    %cst_62 = arith.constant 5.000000e-01 : f32
    %193 = vector.broadcast %cst_62 : f32 to vector<8x96xf32>
    %194 = arith.mulf %193, %192 : vector<8x96xf32>
    %195 = math.tanh %194 : vector<8x96xf32>
    %cst_63 = arith.constant 5.000000e-01 : f32
    %196 = vector.broadcast %cst_63 : f32 to vector<8x96xf32>
    %197 = arith.mulf %196, %195 : vector<8x96xf32>
    %cst_64 = arith.constant 5.000000e-01 : f32
    %198 = vector.broadcast %cst_64 : f32 to vector<8x96xf32>
    %199 = arith.addf %197, %198 : vector<8x96xf32>
    %200 = vector.extract_strided_slice %191 {offsets = [0, 96], sizes = [8, 32], strides = [1, 1]} : vector<8x128xf32> to vector<8x32xf32>
    %201 = math.tanh %200 : vector<8x32xf32>
    %202 = vector.extract_strided_slice %199 {offsets = [0, 0], sizes = [8, 32], strides = [1, 1]} : vector<8x96xf32> to vector<8x32xf32>
    %203 = vector.extract_strided_slice %199 {offsets = [0, 32], sizes = [8, 32], strides = [1, 1]} : vector<8x96xf32> to vector<8x32xf32>
    %204 = vector.extract_strided_slice %199 {offsets = [0, 64], sizes = [8, 32], strides = [1, 1]} : vector<8x96xf32> to vector<8x32xf32>
    %205 = arith.mulf %203, %164 : vector<8x32xf32>
    %206 = arith.mulf %202, %201 : vector<8x32xf32>
    %207 = arith.addf %205, %206 : vector<8x32xf32>
    %208 = math.tanh %207 : vector<8x32xf32>
    %209 = arith.mulf %204, %208 : vector<8x32xf32>
    %cst_65 = arith.constant dense<0.000000e+00> : vector<8x128xf32>
    %210 = tpu.matmul %209, %8, %cst_65 {dimension_numbers = #tpu.dot_dimension_numbers<[1], [0], [0], [1], [0, 0, 1, 1], [], []>} : vector<8x32xf32>, vector<32x128xf32>, vector<8x128xf32> -> vector<8x128xf32>
    %cst_66 = arith.constant dense<0.000000e+00> : vector<8x128xf32>
    %211 = tpu.matmul %188, %9, %cst_66 {dimension_numbers = #tpu.dot_dimension_numbers<[1], [0], [0], [1], [0, 0, 1, 1], [], []>} : vector<8x32xf32>, vector<32x128xf32>, vector<8x128xf32> -> vector<8x128xf32>
    %212 = arith.addf %210, %211 : vector<8x128xf32>
    %213 = arith.addf %212, %12 : vector<8x128xf32>
    %214 = vector.extract_strided_slice %213 {offsets = [0, 0], sizes = [8, 96], strides = [1, 1]} : vector<8x128xf32> to vector<8x96xf32>
    %cst_67 = arith.constant 5.000000e-01 : f32
    %215 = vector.broadcast %cst_67 : f32 to vector<8x96xf32>
    %216 = arith.mulf %215, %214 : vector<8x96xf32>
    %217 = math.tanh %216 : vector<8x96xf32>
    %cst_68 = arith.constant 5.000000e-01 : f32
    %218 = vector.broadcast %cst_68 : f32 to vector<8x96xf32>
    %219 = arith.mulf %218, %217 : vector<8x96xf32>
    %cst_69 = arith.constant 5.000000e-01 : f32
    %220 = vector.broadcast %cst_69 : f32 to vector<8x96xf32>
    %221 = arith.addf %219, %220 : vector<8x96xf32>
    %222 = vector.extract_strided_slice %213 {offsets = [0, 96], sizes = [8, 32], strides = [1, 1]} : vector<8x128xf32> to vector<8x32xf32>
    %223 = math.tanh %222 : vector<8x32xf32>
    %224 = vector.extract_strided_slice %221 {offsets = [0, 0], sizes = [8, 32], strides = [1, 1]} : vector<8x96xf32> to vector<8x32xf32>
    %225 = vector.extract_strided_slice %221 {offsets = [0, 32], sizes = [8, 32], strides = [1, 1]} : vector<8x96xf32> to vector<8x32xf32>
    %226 = vector.extract_strided_slice %221 {offsets = [0, 64], sizes = [8, 32], strides = [1, 1]} : vector<8x96xf32> to vector<8x32xf32>
    %227 = arith.mulf %225, %186 : vector<8x32xf32>
    %228 = arith.mulf %224, %223 : vector<8x32xf32>
    %229 = arith.addf %227, %228 : vector<8x32xf32>
    %230 = math.tanh %229 : vector<8x32xf32>
    %231 = arith.mulf %226, %230 : vector<8x32xf32>
    %c40 = arith.constant 40 : index
    %c0_70 = arith.constant 0 : index
    %232 = vector.load %arg12[%c40, %c0_70] : memref<64x128xf32, #tpu.memory_space<vmem>>, vector<8x128xf32>
    %cst_71 = arith.constant dense<0.000000e+00> : vector<8x128xf32>
    %233 = tpu.matmul %209, %7, %cst_71 {dimension_numbers = #tpu.dot_dimension_numbers<[1], [0], [0], [1], [0, 0, 1, 1], [], []>} : vector<8x32xf32>, vector<32x128xf32>, vector<8x128xf32> -> vector<8x128xf32>
    %234 = arith.addf %232, %233 : vector<8x128xf32>
    %235 = vector.extract_strided_slice %234 {offsets = [0, 0], sizes = [8, 96], strides = [1, 1]} : vector<8x128xf32> to vector<8x96xf32>
    %cst_72 = arith.constant 5.000000e-01 : f32
    %236 = vector.broadcast %cst_72 : f32 to vector<8x96xf32>
    %237 = arith.mulf %236, %235 : vector<8x96xf32>
    %238 = math.tanh %237 : vector<8x96xf32>
    %cst_73 = arith.constant 5.000000e-01 : f32
    %239 = vector.broadcast %cst_73 : f32 to vector<8x96xf32>
    %240 = arith.mulf %239, %238 : vector<8x96xf32>
    %cst_74 = arith.constant 5.000000e-01 : f32
    %241 = vector.broadcast %cst_74 : f32 to vector<8x96xf32>
    %242 = arith.addf %240, %241 : vector<8x96xf32>
    %243 = vector.extract_strided_slice %234 {offsets = [0, 96], sizes = [8, 32], strides = [1, 1]} : vector<8x128xf32> to vector<8x32xf32>
    %244 = math.tanh %243 : vector<8x32xf32>
    %245 = vector.extract_strided_slice %242 {offsets = [0, 0], sizes = [8, 32], strides = [1, 1]} : vector<8x96xf32> to vector<8x32xf32>
    %246 = vector.extract_strided_slice %242 {offsets = [0, 32], sizes = [8, 32], strides = [1, 1]} : vector<8x96xf32> to vector<8x32xf32>
    %247 = vector.extract_strided_slice %242 {offsets = [0, 64], sizes = [8, 32], strides = [1, 1]} : vector<8x96xf32> to vector<8x32xf32>
    %248 = arith.mulf %246, %207 : vector<8x32xf32>
    %249 = arith.mulf %245, %244 : vector<8x32xf32>
    %250 = arith.addf %248, %249 : vector<8x32xf32>
    %251 = math.tanh %250 : vector<8x32xf32>
    %252 = arith.mulf %247, %251 : vector<8x32xf32>
    %cst_75 = arith.constant dense<0.000000e+00> : vector<8x128xf32>
    %253 = tpu.matmul %252, %8, %cst_75 {dimension_numbers = #tpu.dot_dimension_numbers<[1], [0], [0], [1], [0, 0, 1, 1], [], []>} : vector<8x32xf32>, vector<32x128xf32>, vector<8x128xf32> -> vector<8x128xf32>
    %cst_76 = arith.constant dense<0.000000e+00> : vector<8x128xf32>
    %254 = tpu.matmul %231, %9, %cst_76 {dimension_numbers = #tpu.dot_dimension_numbers<[1], [0], [0], [1], [0, 0, 1, 1], [], []>} : vector<8x32xf32>, vector<32x128xf32>, vector<8x128xf32> -> vector<8x128xf32>
    %255 = arith.addf %253, %254 : vector<8x128xf32>
    %256 = arith.addf %255, %12 : vector<8x128xf32>
    %257 = vector.extract_strided_slice %256 {offsets = [0, 0], sizes = [8, 96], strides = [1, 1]} : vector<8x128xf32> to vector<8x96xf32>
    %cst_77 = arith.constant 5.000000e-01 : f32
    %258 = vector.broadcast %cst_77 : f32 to vector<8x96xf32>
    %259 = arith.mulf %258, %257 : vector<8x96xf32>
    %260 = math.tanh %259 : vector<8x96xf32>
    %cst_78 = arith.constant 5.000000e-01 : f32
    %261 = vector.broadcast %cst_78 : f32 to vector<8x96xf32>
    %262 = arith.mulf %261, %260 : vector<8x96xf32>
    %cst_79 = arith.constant 5.000000e-01 : f32
    %263 = vector.broadcast %cst_79 : f32 to vector<8x96xf32>
    %264 = arith.addf %262, %263 : vector<8x96xf32>
    %265 = vector.extract_strided_slice %256 {offsets = [0, 96], sizes = [8, 32], strides = [1, 1]} : vector<8x128xf32> to vector<8x32xf32>
    %266 = math.tanh %265 : vector<8x32xf32>
    %267 = vector.extract_strided_slice %264 {offsets = [0, 0], sizes = [8, 32], strides = [1, 1]} : vector<8x96xf32> to vector<8x32xf32>
    %268 = vector.extract_strided_slice %264 {offsets = [0, 32], sizes = [8, 32], strides = [1, 1]} : vector<8x96xf32> to vector<8x32xf32>
    %269 = vector.extract_strided_slice %264 {offsets = [0, 64], sizes = [8, 32], strides = [1, 1]} : vector<8x96xf32> to vector<8x32xf32>
    %270 = arith.mulf %268, %229 : vector<8x32xf32>
    %271 = arith.mulf %267, %266 : vector<8x32xf32>
    %272 = arith.addf %270, %271 : vector<8x32xf32>
    %273 = math.tanh %272 : vector<8x32xf32>
    %274 = arith.mulf %269, %273 : vector<8x32xf32>
    %c48 = arith.constant 48 : index
    %c0_80 = arith.constant 0 : index
    %275 = vector.load %arg12[%c48, %c0_80] : memref<64x128xf32, #tpu.memory_space<vmem>>, vector<8x128xf32>
    %cst_81 = arith.constant dense<0.000000e+00> : vector<8x128xf32>
    %276 = tpu.matmul %252, %7, %cst_81 {dimension_numbers = #tpu.dot_dimension_numbers<[1], [0], [0], [1], [0, 0, 1, 1], [], []>} : vector<8x32xf32>, vector<32x128xf32>, vector<8x128xf32> -> vector<8x128xf32>
    %277 = arith.addf %275, %276 : vector<8x128xf32>
    %278 = vector.extract_strided_slice %277 {offsets = [0, 0], sizes = [8, 96], strides = [1, 1]} : vector<8x128xf32> to vector<8x96xf32>
    %cst_82 = arith.constant 5.000000e-01 : f32
    %279 = vector.broadcast %cst_82 : f32 to vector<8x96xf32>
    %280 = arith.mulf %279, %278 : vector<8x96xf32>
    %281 = math.tanh %280 : vector<8x96xf32>
    %cst_83 = arith.constant 5.000000e-01 : f32
    %282 = vector.broadcast %cst_83 : f32 to vector<8x96xf32>
    %283 = arith.mulf %282, %281 : vector<8x96xf32>
    %cst_84 = arith.constant 5.000000e-01 : f32
    %284 = vector.broadcast %cst_84 : f32 to vector<8x96xf32>
    %285 = arith.addf %283, %284 : vector<8x96xf32>
    %286 = vector.extract_strided_slice %277 {offsets = [0, 96], sizes = [8, 32], strides = [1, 1]} : vector<8x128xf32> to vector<8x32xf32>
    %287 = math.tanh %286 : vector<8x32xf32>
    %288 = vector.extract_strided_slice %285 {offsets = [0, 0], sizes = [8, 32], strides = [1, 1]} : vector<8x96xf32> to vector<8x32xf32>
    %289 = vector.extract_strided_slice %285 {offsets = [0, 32], sizes = [8, 32], strides = [1, 1]} : vector<8x96xf32> to vector<8x32xf32>
    %290 = vector.extract_strided_slice %285 {offsets = [0, 64], sizes = [8, 32], strides = [1, 1]} : vector<8x96xf32> to vector<8x32xf32>
    %291 = arith.mulf %289, %250 : vector<8x32xf32>
    %292 = arith.mulf %288, %287 : vector<8x32xf32>
    %293 = arith.addf %291, %292 : vector<8x32xf32>
    %294 = math.tanh %293 : vector<8x32xf32>
    %295 = arith.mulf %290, %294 : vector<8x32xf32>
    %cst_85 = arith.constant dense<0.000000e+00> : vector<8x128xf32>
    %296 = tpu.matmul %295, %8, %cst_85 {dimension_numbers = #tpu.dot_dimension_numbers<[1], [0], [0], [1], [0, 0, 1, 1], [], []>} : vector<8x32xf32>, vector<32x128xf32>, vector<8x128xf32> -> vector<8x128xf32>
    %cst_86 = arith.constant dense<0.000000e+00> : vector<8x128xf32>
    %297 = tpu.matmul %274, %9, %cst_86 {dimension_numbers = #tpu.dot_dimension_numbers<[1], [0], [0], [1], [0, 0, 1, 1], [], []>} : vector<8x32xf32>, vector<32x128xf32>, vector<8x128xf32> -> vector<8x128xf32>
    %298 = arith.addf %296, %297 : vector<8x128xf32>
    %299 = arith.addf %298, %12 : vector<8x128xf32>
    %300 = vector.extract_strided_slice %299 {offsets = [0, 0], sizes = [8, 96], strides = [1, 1]} : vector<8x128xf32> to vector<8x96xf32>
    %cst_87 = arith.constant 5.000000e-01 : f32
    %301 = vector.broadcast %cst_87 : f32 to vector<8x96xf32>
    %302 = arith.mulf %301, %300 : vector<8x96xf32>
    %303 = math.tanh %302 : vector<8x96xf32>
    %cst_88 = arith.constant 5.000000e-01 : f32
    %304 = vector.broadcast %cst_88 : f32 to vector<8x96xf32>
    %305 = arith.mulf %304, %303 : vector<8x96xf32>
    %cst_89 = arith.constant 5.000000e-01 : f32
    %306 = vector.broadcast %cst_89 : f32 to vector<8x96xf32>
    %307 = arith.addf %305, %306 : vector<8x96xf32>
    %308 = vector.extract_strided_slice %299 {offsets = [0, 96], sizes = [8, 32], strides = [1, 1]} : vector<8x128xf32> to vector<8x32xf32>
    %309 = math.tanh %308 : vector<8x32xf32>
    %310 = vector.extract_strided_slice %307 {offsets = [0, 0], sizes = [8, 32], strides = [1, 1]} : vector<8x96xf32> to vector<8x32xf32>
    %311 = vector.extract_strided_slice %307 {offsets = [0, 32], sizes = [8, 32], strides = [1, 1]} : vector<8x96xf32> to vector<8x32xf32>
    %312 = vector.extract_strided_slice %307 {offsets = [0, 64], sizes = [8, 32], strides = [1, 1]} : vector<8x96xf32> to vector<8x32xf32>
    %313 = arith.mulf %311, %272 : vector<8x32xf32>
    %314 = arith.mulf %310, %309 : vector<8x32xf32>
    %315 = arith.addf %313, %314 : vector<8x32xf32>
    %316 = math.tanh %315 : vector<8x32xf32>
    %317 = arith.mulf %312, %316 : vector<8x32xf32>
    %c56 = arith.constant 56 : index
    %c0_90 = arith.constant 0 : index
    %318 = vector.load %arg12[%c56, %c0_90] : memref<64x128xf32, #tpu.memory_space<vmem>>, vector<8x128xf32>
    %cst_91 = arith.constant dense<0.000000e+00> : vector<8x128xf32>
    %319 = tpu.matmul %295, %7, %cst_91 {dimension_numbers = #tpu.dot_dimension_numbers<[1], [0], [0], [1], [0, 0, 1, 1], [], []>} : vector<8x32xf32>, vector<32x128xf32>, vector<8x128xf32> -> vector<8x128xf32>
    %320 = arith.addf %318, %319 : vector<8x128xf32>
    %321 = vector.extract_strided_slice %320 {offsets = [0, 0], sizes = [8, 96], strides = [1, 1]} : vector<8x128xf32> to vector<8x96xf32>
    %cst_92 = arith.constant 5.000000e-01 : f32
    %322 = vector.broadcast %cst_92 : f32 to vector<8x96xf32>
    %323 = arith.mulf %322, %321 : vector<8x96xf32>
    %324 = math.tanh %323 : vector<8x96xf32>
    %cst_93 = arith.constant 5.000000e-01 : f32
    %325 = vector.broadcast %cst_93 : f32 to vector<8x96xf32>
    %326 = arith.mulf %325, %324 : vector<8x96xf32>
    %cst_94 = arith.constant 5.000000e-01 : f32
    %327 = vector.broadcast %cst_94 : f32 to vector<8x96xf32>
    %328 = arith.addf %326, %327 : vector<8x96xf32>
    %329 = vector.extract_strided_slice %320 {offsets = [0, 96], sizes = [8, 32], strides = [1, 1]} : vector<8x128xf32> to vector<8x32xf32>
    %330 = math.tanh %329 : vector<8x32xf32>
    %331 = vector.extract_strided_slice %328 {offsets = [0, 0], sizes = [8, 32], strides = [1, 1]} : vector<8x96xf32> to vector<8x32xf32>
    %332 = vector.extract_strided_slice %328 {offsets = [0, 32], sizes = [8, 32], strides = [1, 1]} : vector<8x96xf32> to vector<8x32xf32>
    %333 = vector.extract_strided_slice %328 {offsets = [0, 64], sizes = [8, 32], strides = [1, 1]} : vector<8x96xf32> to vector<8x32xf32>
    %334 = arith.mulf %332, %293 : vector<8x32xf32>
    %335 = arith.mulf %331, %330 : vector<8x32xf32>
    %336 = arith.addf %334, %335 : vector<8x32xf32>
    %337 = math.tanh %336 : vector<8x32xf32>
    %338 = arith.mulf %333, %337 : vector<8x32xf32>
    %cst_95 = arith.constant dense<0.000000e+00> : vector<8x128xf32>
    %339 = tpu.matmul %338, %8, %cst_95 {dimension_numbers = #tpu.dot_dimension_numbers<[1], [0], [0], [1], [0, 0, 1, 1], [], []>} : vector<8x32xf32>, vector<32x128xf32>, vector<8x128xf32> -> vector<8x128xf32>
    %cst_96 = arith.constant dense<0.000000e+00> : vector<8x128xf32>
    %340 = tpu.matmul %317, %9, %cst_96 {dimension_numbers = #tpu.dot_dimension_numbers<[1], [0], [0], [1], [0, 0, 1, 1], [], []>} : vector<8x32xf32>, vector<32x128xf32>, vector<8x128xf32> -> vector<8x128xf32>
    %341 = arith.addf %339, %340 : vector<8x128xf32>
    %342 = arith.addf %341, %12 : vector<8x128xf32>
    %343 = vector.extract_strided_slice %342 {offsets = [0, 0], sizes = [8, 96], strides = [1, 1]} : vector<8x128xf32> to vector<8x96xf32>
    %cst_97 = arith.constant 5.000000e-01 : f32
    %344 = vector.broadcast %cst_97 : f32 to vector<8x96xf32>
    %345 = arith.mulf %344, %343 : vector<8x96xf32>
    %346 = math.tanh %345 : vector<8x96xf32>
    %cst_98 = arith.constant 5.000000e-01 : f32
    %347 = vector.broadcast %cst_98 : f32 to vector<8x96xf32>
    %348 = arith.mulf %347, %346 : vector<8x96xf32>
    %cst_99 = arith.constant 5.000000e-01 : f32
    %349 = vector.broadcast %cst_99 : f32 to vector<8x96xf32>
    %350 = arith.addf %348, %349 : vector<8x96xf32>
    %351 = vector.extract_strided_slice %342 {offsets = [0, 96], sizes = [8, 32], strides = [1, 1]} : vector<8x128xf32> to vector<8x32xf32>
    %352 = math.tanh %351 : vector<8x32xf32>
    %353 = vector.extract_strided_slice %350 {offsets = [0, 0], sizes = [8, 32], strides = [1, 1]} : vector<8x96xf32> to vector<8x32xf32>
    %354 = vector.extract_strided_slice %350 {offsets = [0, 32], sizes = [8, 32], strides = [1, 1]} : vector<8x96xf32> to vector<8x32xf32>
    %355 = vector.extract_strided_slice %350 {offsets = [0, 64], sizes = [8, 32], strides = [1, 1]} : vector<8x96xf32> to vector<8x32xf32>
    %356 = arith.mulf %354, %315 : vector<8x32xf32>
    %357 = arith.mulf %353, %352 : vector<8x32xf32>
    %358 = arith.addf %356, %357 : vector<8x32xf32>
    %359 = math.tanh %358 : vector<8x32xf32>
    %360 = arith.mulf %355, %359 : vector<8x32xf32>
    %c0_100 = arith.constant 0 : index
    %c0_101 = arith.constant 0 : index
    %361 = vector.load %arg7[%c0_100, %c0_101] : memref<32x32xf32, #tpu.memory_space<vmem>>, vector<32x32xf32>
    %cst_102 = arith.constant dense<0.000000e+00> : vector<8x32xf32>
    %362 = tpu.matmul %360, %361, %cst_102 {dimension_numbers = #tpu.dot_dimension_numbers<[1], [0], [0], [1], [0, 0, 1, 1], [], []>} : vector<8x32xf32>, vector<32x32xf32>, vector<8x32xf32> -> vector<8x32xf32>
    %c0_103 = arith.constant 0 : index
    %c0_104 = arith.constant 0 : index
    %363 = vector.load %arg8[%c0_103, %c0_104] : memref<1x32xf32, #tpu.memory_space<vmem>>, vector<1x32xf32>
    %364 = vector.broadcast %363 : vector<1x32xf32> to vector<8x32xf32>
    %365 = arith.addf %362, %364 : vector<8x32xf32>
    %cst_105 = arith.constant 0.000000e+00 : f32
    %366 = vector.broadcast %cst_105 : f32 to vector<8x32xf32>
    %367 = arith.maximumf %365, %366 : vector<8x32xf32>
    %c0_106 = arith.constant 0 : index
    %c0_107 = arith.constant 0 : index
    %368 = vector.load %arg9[%c0_106, %c0_107] : memref<32x8xf32, #tpu.memory_space<vmem>>, vector<32x8xf32>
    %cst_108 = arith.constant dense<0.000000e+00> : vector<8x8xf32>
    %369 = tpu.matmul %367, %368, %cst_108 {dimension_numbers = #tpu.dot_dimension_numbers<[1], [0], [0], [1], [0, 0, 1, 1], [], []>} : vector<8x32xf32>, vector<32x8xf32>, vector<8x8xf32> -> vector<8x8xf32>
    %c0_109 = arith.constant 0 : index
    %c0_110 = arith.constant 0 : index
    %370 = vector.load %arg10[%c0_109, %c0_110] : memref<1x8xf32, #tpu.memory_space<vmem>>, vector<1x8xf32>
    %371 = vector.broadcast %370 : vector<1x8xf32> to vector<8x8xf32>
    %372 = arith.addf %369, %371 : vector<8x8xf32>
    %c0_111 = arith.constant 0 : index
    %c0_112 = arith.constant 0 : index
    %373 = vector.load %arg11[%c0_111, %c0_112] : memref<8x8xf32, #tpu.memory_space<vmem>>, vector<8x8xf32>
    tpu.vector_store %arg11[%c0_111, %c0_112], %372 {strides = array<i32>} : memref<8x8xf32, #tpu.memory_space<vmem>>, vector<8x8xf32>,
    return
  }
}

</mosaic_0001>

<bundles_post_ra>
// kernel: tpu_custom_call.1
= control target key start
LH: loop header
LB: loop body
LE: loop exit
PB: predicated region body
PF: predicated region fallthrough
CT: control target
= control target key end

     0   :  { %16 = vsyncpa [#allocation4], 0  ;;  %s3888_s0 = inlined_call_operand.vmem [shape: f32[64,16], index: 0, kind: input, shape index: {}]   ;;  %s3889_s1 = inlined_call_operand.hbm [shape: f32[16,128], index: 1, kind: input, shape index: {}]   ;;  %s3890_s2 = inlined_call_operand.vmem [shape: f32[1,128], index: 2, kind: input, shape index: {}]   ;;  %s3891_s3 = inlined_call_operand.vmem [shape: f32[32,128], index: 3, kind: input, shape index: {}]   ;;  %s3892_s4 = inlined_call_operand.vmem [shape: f32[32,128], index: 4, kind: input, shape index: {}]   ;;  %s3893_s5 = inlined_call_operand.vmem [shape: f32[32,128], index: 5, kind: input, shape index: {}]   ;;  %s3894_s6 = inlined_call_operand.vmem [shape: f32[1,128], index: 6, kind: input, shape index: {}]   ;;  %s3895_s7 = inlined_call_operand.vmem [shape: f32[32,32], index: 7, kind: input, shape index: {}]   ;;  %s3896_s8 = inlined_call_operand.vmem [shape: f32[1,32], index: 8, kind: input, shape index: {}]   ;;  %s3897_s9 = inlined_call_operand.vmem [shape: f32[32,8], index: 9, kind: input, shape index: {}]   ;;  %s3898_s10 = inlined_call_operand.vmem [shape: f32[1,8], index: 10, kind: input, shape index: {}]   ;;  %s3899_s11 = inlined_call_operand.hbm [shape: f32[8,8], index: 11, kind: output, shape index: {}]  }
   0x1   :  { %17 = vsyncpa [#allocation5], 0  ;;  %s3342_s17 = smov [#allocation3]   ;;  %s3294_s21 = scalar_lea.hbm %s3889_s1, 256 }
   0x2   :  { %s25_s18 = sshll.u32 %s3342_s17, 4  ;;  %p3295_p0 = scmp.ne.s32.totalorder %s3889_s1, %s3294_s21  ;;  %s26_s18 = int_to_ptr.vmem [resolvable:$true] %s25_s18 }
   0x3   :  { %p3298_p1 = scmp.lt.u32.totalorder %s3294_s21, %s3889_s1 }
   0x5   :  { %p3300_p2 = pnand %p3298_p1, %p3295_p0 }
   0x7   :  { %3303 = shalt.err (!%p3300_p2)
}
   0x8   :  { %s3304_s26 = scalar_lea.vmem %s26_s18, 256  ;;  %p3309_p4 = scmp.lt.s32.totalorder %s26_s18, %s26_s18 }
   0x9   :  { %p3305_p3 = scmp.ne.s32.totalorder %s26_s18, %s3304_s26  ;;  %p3310_p5 = scmp.lt.s32.totalorder %s3304_s26, %s3304_s26 }
   0xb   :  { %p3311_p6 = por %p3310_p5, %p3309_p4 }
   0xd   :  { %p3312_p7 = pnand %p3311_p6, %p3305_p3 }
   0xf   :  { %3315 = shalt.err (!%p3312_p7)
}
  0x10   :  { %s3343_s27 = smov 128   ;;  %s3344_s28 = smov 8  }
  0x11   :  { %31 = dma.hbm_to_vmem [thread:$0]  %s3889_s1, 256, %s26_s18, [#allocation4], %s3343_s27, %s3343_s27, %s3344_s28  }
  0x12   :  { %3338 = dma.done.wait [#allocation4], 256  }
  0x13   :  { %3339 = vsyncadd [#allocation4], 4294967040  ;;  %v3345_v0 = vmov 0.0|0.0   ;;  %vm3346_vm0 = vmmov 0   ;;  %v3347_v1 = vmov 0.0   ;;  %vm70_vm1 = vcmask 130048  }
  0x14   :  { %3032 = vmatprep.subr.bf16.mxu1 %v3345_v0  ;;  %2750 = vmatprep.mubr.msk.f32.mxu1 %vm3346_vm0, %v3347_v1  ;;  %v61_v2 = vld [vmem:[#allocation3] sm:$0xff]  ;;  %v62_v3 = vld [vmem:[#allocation3 + $0x8] sm:$0xff]  ;;  %v210_v9 = vld [vmem:[%s3891_s3 + $0x10] sm:$0xff]  ;;  %s3348_s24 = smov 32   ;;  %vm228_vm2 = vcmask 261120   ;;  %s3350_s29 = smov [#allocation6]  }
  0x15   :  { %v208_v4 = vld [vmem:[%s3891_s3] sm:$0xff]  ;;  %v3028_v5 = vpack.c.bf16 %v62_v3, %v61_v2  ;;  %v209_v6 = vld [vmem:[%s3891_s3 + $0x8] sm:$0xff]  ;;  %v211_v10 = vld [vmem:[%s3891_s3 + $0x18] sm:$0xff]  ;;  %s2541_s30 = sshll.u32 %s3350_s29, 4  ;;  %vm2533_vm3 = vcmask 64512   ;;  %s2542_s30 = int_to_ptr.vmem [resolvable:$true] %s2541_s30 }
  0x16   :  { %v53_v7 = vld [vmem:[%s3888_s0] sm:$0xff]  ;;  %v3435_v8 = vpack.c.bf16 %v209_v6, %v208_v4  ;;  %v54_v11 = vld [vmem:[%s3888_s0 + $0x8] sm:$0xff]  ;;  %v3448_v12 = vpack.c.bf16 %v211_v10, %v210_v9  ;;  %v55_v35 = vld [vmem:[%s3888_s0 + $0x10] sm:$0xff]  ;;  %p3321_p9 = scmp.lt.s32.totalorder %s2542_s30, %s2542_s30 }
  0x17   :  { %2730 = vmatprep.mubr.msk.f32.mxu0 %vm70_vm1, %v53_v7  ;;  %3029 = vmatprep.subr.bf16.mxu0 %v3028_v5  ;;  %v3461_v13 = vld [vmem:[%s3890_s2] ss:$0 sm:$0xff]  ;;  %v213_v31 = vld [vmem:[%s3892_s4 + $0x8] sm:$0xff]  ;;  %v56_v36 = vld [vmem:[%s3888_s0 + $0x18] sm:$0xff] }
  0x18   :  { %3034 = vmatpush3.bf16.msra.mxu1 %v3435_v8  ;;  %3031 = vmatpush3.bf16.msra.mxu0 %v3028_v5  ;;  %v212_v30 = vld [vmem:[%s3892_s4] sm:$0xff]  ;;  %v217_v34 = vld [vmem:[%s3893_s5 + $0x8] sm:$0xff]  ;;  %v218_v38 = vld [vmem:[%s3893_s5 + $0x10] sm:$0xff] }
  0x19   :  { %3035 = vmatprep.subr.bf16.mxu1 %v3345_v0  ;;  %3044 = vmatprep.subr.bf16.mxu0 %v3345_v0  ;;  %v216_v32 = vld [vmem:[%s3893_s5] sm:$0xff]  ;;  %v3480_v33 = vpack.c.bf16 %v213_v31, %v212_v30  ;;  %v219_v39 = vld [vmem:[%s3893_s5 + $0x18] sm:$0xff]  ;;  %v214_v41 = vld [vmem:[%s3892_s4 + $0x10] sm:$0xff] }
  0x1a   :  { %v3491_v37 = vpack.c.bf16 %v217_v34, %v216_v32  ;;  %v57_v40 = vld [vmem:[%s3888_s0 + $0x20] sm:$0xff]  ;;  %v215_v42 = vld [vmem:[%s3892_s4 + $0x18] sm:$0xff]  ;;  %v3512_v43 = vpack.c.bf16 %v219_v39, %v218_v38  ;;  %v58_v45 = vld [vmem:[%s3888_s0 + $0x28] sm:$0xff] }
  0x1b   :  { %2731 = vmatmul.mubr.msk.f32.vlgmr.msra.gmra.mrb[0].mxu0 %vm70_vm1, %v54_v11  ;;  %v3514_v44 = vpack.c.bf16 %v215_v42, %v214_v41  ;;  %v59_v46 = vld [vmem:[%s3888_s0 + $0x30] sm:$0xff]  ;;  %v60_v47 = vld [vmem:[%s3888_s0 + $0x38] sm:$0xff]  ;;  %s3349_s0 = smov 64   ;;  %v3577_v61 = vld [vmem:[%s3894_s6] ss:$0 sm:$0xff] }
  0x1c   :  { %3037 = vmatpush3.bf16.msra.mxu1 %v3448_v12  ;;  %2733 = vmatprep.mubr.msk.f32.mxu0 %vm70_vm1, %v55_v35 }
  0x1d   :  { %3038 = vmatprep.subr.bf16.mxu1 %v3345_v0  ;;  %3046 = vmatpush3.bf16.msra.mxu0 %v3480_v33 }
  0x1e   :  { %3047 = vmatprep.subr.bf16.mxu0 %v3345_v0 }
  0x1f   :  { %2751 = vmatmul.mubr.f32.vlgmr.msra.gmra.mrb[0].mxu1 %v3347_v1  ;;  %2734 = vmatmul.mubr.msk.f32.gmra.mrb[2].mxu0 %vm70_vm1, %v56_v36 }
  0x20   :  { %2761 = vmatprep.mubr.msk.f32.mxu1 %vm3346_vm0, %v3347_v1  ;;  %3040 = vmatpush3.bf16.msra.mxu1 %v3491_v37 }
  0x21   :  { %3041 = vmatprep.subr.bf16.mxu1 %v3345_v0  ;;  %2736 = vmatprep.mubr.msk.f32.mxu0 %vm70_vm1, %v57_v40 }
  0x22   :  { %3049 = vmatpush3.bf16.msra.mxu0 %v3514_v44 }
  0x23   :  { %2737 = vmatmul.mubr.msk.f32.gmra.mrb[4].mxu0 %vm70_vm1, %v58_v45  ;;  %3056 = vmatprep.subr.bf16.mxu0 %v3345_v0 }
  0x24   :  { %3043 = vmatpush3.bf16.msra.mxu1 %v3512_v43  ;;  %2739 = vmatprep.mubr.msk.f32.mxu0 %vm70_vm1, %v59_v46 }
  0x25   :  { %3050 = vmatprep.subr.bf16.mxu1 %v3345_v0 }
  0x27   :  { %2762 = vmatmul.mubr.f32.vlgmr.msra.gmra.mrb[2].mxu1 %v3347_v1  ;;  %2740 = vmatmul.mubr.msk.f32.gmra.mrb[6].mxu0 %vm70_vm1, %v60_v47 }
  0x28   :  { %3052 = vmatpush3.bf16.msra.mxu1 %v3435_v8  ;;  %2772 = vmatprep.mubr.msk.f32.mxu0 %vm3346_vm0, %v3347_v1 }
  0x29   :  { %3053 = vmatprep.subr.bf16.mxu1 %v3345_v0  ;;  %2783 = vmatprep.mubr.msk.f32.mxu1 %vm3346_vm0, %v3347_v1 }
  0x2c   :  { %3055 = vmatpush3.bf16.msra.mxu1 %v3448_v12 }
  0x2d   :  { %3062 = vmatprep.subr.bf16.mxu1 %v3345_v0 }
  0xee   :  { %v3463_v14 = vpop.f32.mrb[0].mxu0 }
  0xef   :  { %v161_v15 = vpop.f32.mrb[1].mxu0  ;;  %v167_v60 = vadd.f32 %v3463_v14, %v3461_v13 }
  0xf0   :  { %v162_v16 = vadd.f32 %v3461_v13, %v161_v15 }
  0xf2   :  { %v298_v17 = vpop.f32.mrb[0].mxu1  ;;  %v3546_v51 = vpop.f32.mrb[2].mxu0 }
  0xf3   :  { %v302_v18 = vadd.f32 %v298_v17, %v162_v16  ;;  %v2752_v19 = vpop.f32.mrb[1].mxu1  ;;  %v3548_v52 = vpop.f32.mrb[3].mxu0 }
  0xf5   :  { %3197 = vtanh.f32 %v302_v18  ;;  %v303_v21 = vmul.f32 0.5, %v302_v18 }
  0xf6   :  { %v3550_v53 = vpop.f32.mrb[4].mxu0 }
  0xf7   :  { %3199 = vtanh.f32 %v303_v21  ;;  %v3552_v54 = vpop.f32.mrb[5].mxu0 }
  0xfa   :  { %v391_v55 = vpop.f32.mrb[2].mxu1  ;;  %v3554_v56 = vpop.f32.mrb[6].mxu0 }
  0xfb   :  { %v2763_v57 = vpop.f32.mrb[3].mxu1  ;;  %v3556_v58 = vpop.f32.mrb[7].mxu0 }
  0xff   :  { %v3198_v20 = vpop.eup %3197 }
 0x100   :  { %310 = vrot.lane.b32.xlu0 %v3198_v20, %s3348_s24 }
 0x101   :  { %v3200_v22 = vpop.eup %3199 }
 0x102   :  { %v305_v23 = vmul.f32 0.5, %v3200_v22 }
 0x104   :  { %v306_v24 = vadd.f32 0.5, %v305_v23 }
 0x106   :  { %v308_v27 = vmul.f32 0.0, %v306_v24 }
 0x172   :  { %v311_v25 = vpop.permute.xlu0 %310 }
 0x173   :  { %v313_v26 = vmul.f32 %v311_v25, %v306_v24 }
 0x175   :  { %315 = vrot.lane.b32.xlu0 %v313_v26, %s3348_s24 }
 0x1e7   :  { %v316_v28 = vpop.permute.xlu0 %315 }
 0x1e8   :  { %v3468_v29 = vadd.f32 %v316_v28, %v308_v27 }
 0x1ea   :  { %3201 = vtanh.f32 %v3468_v29 }
 0x1f4   :  { %v3202_v48 = vpop.eup %3201 }
 0x1f5   :  { %321 = vrot.lane.b32.xlu1 %v3202_v48, %s3348_s24  ;;  %v172_v48 = vadd.f32 %v3461_v13, %v3548_v52 }
 0x267   :  { %v322_v49 = vpop.permute.xlu1 %321 }
 0x268   :  { %v324_v50 = vmul.f32 %v322_v49, %v306_v24 }
 0x26a   :  { %396 = vrot.lane.b32.xlu1 %v324_v50, %s3349_s0 }
 0x2dc   :  { %v397_v59 = vpop.permute.xlu1 %396 }
 0x2dd   :  { %2773 = vmatmul.mubr.msk.f32.vlgmr.msra.gmra.mrb[8].mxu0 %vm228_vm2, %v397_v59  ;;  %2784 = vmatmul.mubr.msk.f32.vlgmr.msra.gmra.mrb[4].mxu1 %vm228_vm2, %v397_v59 }
 0x2de   :  { %3064 = vmatpush3.bf16.msra.mxu1 %v3480_v33  ;;  %3058 = vmatpush3.bf16.msra.mxu0 %v3491_v37 }
 0x2df   :  { %3065 = vmatprep.subr.bf16.mxu1 %v3345_v0  ;;  %3059 = vmatprep.subr.bf16.mxu0 %v3345_v0 }
 0x2e0   :  { %2805 = vmatprep.mubr.msk.f32.mxu1 %vm3346_vm0, %v3347_v1  ;;  %2794 = vmatprep.mubr.msk.f32.mxu0 %vm3346_vm0, %v3347_v1 }
 0x2e2   :  { %3067 = vmatpush3.bf16.msra.mxu1 %v3514_v44  ;;  %3061 = vmatpush3.bf16.msra.mxu0 %v3512_v43 }
 0x2e3   :  { %3068 = vmatprep.subr.bf16.mxu0 %v3345_v0  ;;  %3074 = vmatprep.subr.bf16.mxu1 %v3345_v0 }
 0x3b0   :  { %v466_v62 = vpop.f32.mrb[8].mxu0  ;;  %v560_v63 = vpop.f32.mrb[4].mxu1 }
 0x3b1   :  { %v467_v2 = vadd.f32 %v466_v62, %v391_v55  ;;  %v564_v3 = vadd.f32 %v560_v63, %v167_v60  ;;  %v2774_v4 = vpop.f32.mrb[9].mxu0  ;;  %v2785_v5 = vpop.f32.mrb[5].mxu1 }
 0x3b3   :  { %v470_v6 = vadd.f32 %v3577_v61, %v467_v2  ;;  %3203 = vtanh.f32 %v564_v3  ;;  %v565_v10 = vmul.f32 0.5, %v564_v3 }
 0x3b5   :  { %3205 = vtanh.f32 %v470_v6  ;;  %v471_v11 = vmul.f32 0.5, %v470_v6 }
 0x3b6   :  { %3207 = vtanh.f32 %v565_v10 }
 0x3b7   :  { %3209 = vtanh.f32 %v471_v11 }
 0x3bd   :  { %v3204_v7 = vpop.eup %3203 }
 0x3be   :  { %572 = vrot.lane.b32.xlu1 %v3204_v7, %s3348_s24 }
 0x3bf   :  { %v3206_v9 = vpop.eup %3205 }
 0x3c0   :  { %478 = vrot.lane.b32.xlu0 %v3206_v9, %s3348_s24  ;;  %v3208_v14 = vpop.eup %3207 }
 0x3c1   :  { %v3210_v15 = vpop.eup %3209  ;;  %v567_v16 = vmul.f32 0.5, %v3208_v14 }
 0x3c2   :  { %v473_v17 = vmul.f32 0.5, %v3210_v15 }
 0x3c3   :  { %v568_v18 = vadd.f32 0.5, %v567_v16 }
 0x3c4   :  { %v474_v21 = vadd.f32 0.5, %v473_v17 }
 0x3c5   :  { %v570_v24 = vmul.f32 %v568_v18, %v3468_v29 }
 0x3c6   :  { %v476_v27 = vmul.f32 0.0, %v474_v21 }
 0x430   :  { %v573_v19 = vpop.permute.xlu1 %572 }
 0x431   :  { %v575_v20 = vmul.f32 %v573_v19, %v568_v18 }
 0x432   :  { %v479_v22 = vpop.permute.xlu0 %478 }
 0x433   :  { %v481_v23 = vmul.f32 %v479_v22, %v474_v21  ;;  %577 = vrot.lane.b32.xlu1 %v575_v20, %s3348_s24 }
 0x435   :  { %483 = vrot.lane.b32.xlu0 %v481_v23, %s3348_s24 }
 0x4a5   :  { %v578_v25 = vpop.permute.xlu1 %577 }
 0x4a6   :  { %v3585_v26 = vadd.f32 %v578_v25, %v570_v24 }
 0x4a7   :  { %v484_v28 = vpop.permute.xlu0 %483 }
 0x4a8   :  { %3211 = vtanh.f32 %v3585_v26  ;;  %v3588_v30 = vadd.f32 %v484_v28, %v476_v27 }
 0x4aa   :  { %3213 = vtanh.f32 %v3588_v30 }
 0x4b2   :  { %v3212_v31 = vpop.eup %3211 }
 0x4b3   :  { %583 = vrot.lane.b32.xlu1 %v3212_v31, %s3348_s24  ;;  %v177_v31 = vadd.f32 %v3546_v51, %v3461_v13 }
 0x4b4   :  { %v3214_v32 = vpop.eup %3213 }
 0x4b5   :  { %489 = vrot.lane.b32.xlu0 %v3214_v32, %s3348_s24 }
 0x525   :  { %v584_v34 = vpop.permute.xlu1 %583 }
 0x526   :  { %v586_v35 = vmul.f32 %v584_v34, %v568_v18 }
 0x527   :  { %v490_v29 = vpop.permute.xlu0 %489 }
 0x528   :  { %v492_v36 = vmul.f32 %v490_v29, %v474_v21  ;;  %663 = vrot.lane.b32.xlu1 %v586_v35, %s3349_s0 }
 0x52a   :  { %588 = vrot.lane.b32.xlu0 %v492_v36, %s3349_s0 }
 0x59a   :  { %v664_v38 = vpop.permute.xlu1 %663 }
 0x59b   :  { %2806 = vmatmul.mubr.msk.f32.vlgmr.msra.gmra.mrb[6].mxu1 %vm228_vm2, %v664_v38 }
 0x59c   :  { %v589_v39 = vpop.permute.xlu0 %588  ;;  %3076 = vmatpush3.bf16.msra.mxu1 %v3491_v37  ;;  %2827 = vmatprep.mubr.msk.f32.mxu1 %vm3346_vm0, %v3347_v1 }
 0x59d   :  { %2795 = vmatmul.mubr.msk.f32.vlgmr.msra.gmra.mrb[10].mxu0 %vm228_vm2, %v589_v39  ;;  %3077 = vmatprep.subr.bf16.mxu1 %v3345_v0 }
 0x59e   :  { %3070 = vmatpush3.bf16.msra.mxu0 %v3435_v8  ;;  %2816 = vmatprep.mubr.msk.f32.mxu0 %vm3346_vm0, %v3347_v1 }
 0x59f   :  { %3071 = vmatprep.subr.bf16.mxu0 %v3345_v0 }
 0x5a0   :  { %3079 = vmatpush3.bf16.msra.mxu1 %v3512_v43 }
 0x5a1   :  { %3086 = vmatprep.subr.bf16.mxu1 %v3345_v0 }
 0x5a2   :  { %3073 = vmatpush3.bf16.msra.mxu0 %v3448_v12 }
 0x5a3   :  { %3080 = vmatprep.subr.bf16.mxu0 %v3345_v0 }
 0x5a5   :  { %2817 = vmatmul.mubr.msk.f32.vlgmr.msra.gmra.mrb[12].mxu0 %vm228_vm2, %v664_v38 }
 0x5a6   :  { %3082 = vmatpush3.bf16.msra.mxu0 %v3480_v33  ;;  %2838 = vmatprep.mubr.msk.f32.mxu0 %vm3346_vm0, %v3347_v1 }
 0x5a7   :  { %3083 = vmatprep.subr.bf16.mxu0 %v3345_v0 }
 0x5aa   :  { %3085 = vmatpush3.bf16.msra.mxu0 %v3514_v44 }
 0x5ab   :  { %3092 = vmatprep.subr.bf16.mxu0 %v3345_v0 }
 0x66e   :  { %v733_v40 = vpop.f32.mrb[6].mxu1 }
 0x66f   :  { %v2807_v41 = vpop.f32.mrb[7].mxu1 }
 0x670   :  { %v658_v42 = vpop.f32.mrb[10].mxu0 }
 0x671   :  { %v734_v45 = vadd.f32 %v733_v40, %v658_v42  ;;  %v2796_v46 = vpop.f32.mrb[11].mxu0 }
 0x673   :  { %v737_v47 = vadd.f32 %v3577_v61, %v734_v45 }
 0x675   :  { %3215 = vtanh.f32 %v737_v47  ;;  %v738_v60 = vmul.f32 0.5, %v737_v47 }
 0x678   :  { %v827_v49 = vpop.f32.mrb[12].mxu0 }
 0x679   :  { %v831_v50 = vadd.f32 %v827_v49, %v172_v48  ;;  %v2818_v55 = vpop.f32.mrb[13].mxu0 }
 0x67b   :  { %3217 = vtanh.f32 %v831_v50  ;;  %v832_v62 = vmul.f32 0.5, %v831_v50 }
 0x67c   :  { %3219 = vtanh.f32 %v738_v60 }
 0x67d   :  { %3221 = vtanh.f32 %v832_v62 }
 0x67f   :  { %v3216_v57 = vpop.eup %3215 }
 0x680   :  { %745 = vrot.lane.b32.xlu0 %v3216_v57, %s3348_s24 }
 0x685   :  { %v3218_v59 = vpop.eup %3217 }
 0x686   :  { %839 = vrot.lane.b32.xlu1 %v3218_v59, %s3348_s24  ;;  %v3220_v63 = vpop.eup %3219 }
 0x687   :  { %v740_v2 = vmul.f32 0.5, %v3220_v63  ;;  %v3222_v3 = vpop.eup %3221 }
 0x688   :  { %v834_v6 = vmul.f32 0.5, %v3222_v3 }
 0x689   :  { %v741_v4 = vadd.f32 0.5, %v740_v2 }
 0x68a   :  { %v835_v7 = vadd.f32 0.5, %v834_v6 }
 0x68b   :  { %v743_v11 = vmul.f32 %v741_v4, %v3588_v30 }
 0x68c   :  { %v837_v16 = vmul.f32 %v835_v7, %v3585_v26 }
 0x6f2   :  { %v746_v5 = vpop.permute.xlu0 %745 }
 0x6f3   :  { %v748_v52 = vmul.f32 %v746_v5, %v741_v4 }
 0x6f5   :  { %750 = vrot.lane.b32.xlu0 %v748_v52, %s3348_s24 }
 0x6f8   :  { %v840_v9 = vpop.permute.xlu1 %839 }
 0x6f9   :  { %v842_v10 = vmul.f32 %v840_v9, %v835_v7 }
 0x6fb   :  { %844 = vrot.lane.b32.xlu1 %v842_v10, %s3348_s24 }
 0x767   :  { %v751_v14 = vpop.permute.xlu0 %750 }
 0x768   :  { %v3624_v15 = vadd.f32 %v751_v14, %v743_v11 }
 0x76a   :  { %3223 = vtanh.f32 %v3624_v15 }
 0x76d   :  { %v845_v17 = vpop.permute.xlu1 %844 }
 0x76e   :  { %v3628_v18 = vadd.f32 %v845_v17, %v837_v16 }
 0x770   :  { %3225 = vtanh.f32 %v3628_v18 }
 0x774   :  { %v3224_v19 = vpop.eup %3223 }
 0x775   :  { %756 = vrot.lane.b32.xlu0 %v3224_v19, %s3348_s24 }
 0x77a   :  { %v3226_v20 = vpop.eup %3225 }
 0x77b   :  { %850 = vrot.lane.b32.xlu1 %v3226_v20, %s3348_s24 }
 0x7e7   :  { %v757_v21 = vpop.permute.xlu0 %756 }
 0x7e8   :  { %v759_v22 = vmul.f32 %v757_v21, %v741_v4  ;;  %v182_v21 = vadd.f32 %v3461_v13, %v3552_v54 }
 0x7ea   :  { %855 = vrot.lane.b32.xlu0 %v759_v22, %s3349_s0 }
 0x7ed   :  { %v851_v23 = vpop.permute.xlu1 %850 }
 0x7ee   :  { %v853_v24 = vmul.f32 %v851_v23, %v835_v7 }
 0x7f0   :  { %930 = vrot.lane.b32.xlu1 %v853_v24, %s3349_s0 }
 0x85c   :  { %v856_v25 = vpop.permute.xlu0 %855 }
 0x85d   :  { %2828 = vmatmul.mubr.msk.f32.vlgmr.msra.gmra.mrb[8].mxu1 %vm228_vm2, %v856_v25 }
 0x85e   :  { %3088 = vmatpush3.bf16.msra.mxu1 %v3435_v8  ;;  %2849 = vmatprep.mubr.msk.f32.mxu1 %vm3346_vm0, %v3347_v1 }
 0x85f   :  { %3089 = vmatprep.subr.bf16.mxu1 %v3345_v0 }
 0x862   :  { %3091 = vmatpush3.bf16.msra.mxu1 %v3448_v12  ;;  %v931_v26 = vpop.permute.xlu1 %930 }
 0x863   :  { %2839 = vmatmul.mubr.msk.f32.vlgmr.msra.gmra.mrb[14].mxu0 %vm228_vm2, %v931_v26  ;;  %3098 = vmatprep.subr.bf16.mxu1 %v3345_v0 }
 0x864   :  { %3094 = vmatpush3.bf16.msra.mxu0 %v3491_v37  ;;  %2860 = vmatprep.mubr.msk.f32.mxu0 %vm3346_vm0, %v3347_v1 }
 0x865   :  { %2850 = vmatmul.mubr.msk.f32.vlgmr.msra.gmra.mrb[10].mxu1 %vm228_vm2, %v931_v26  ;;  %3095 = vmatprep.subr.bf16.mxu0 %v3345_v0 }
 0x866   :  { %3100 = vmatpush3.bf16.msra.mxu1 %v3480_v33  ;;  %2871 = vmatprep.mubr.msk.f32.mxu1 %vm3346_vm0, %v3347_v1 }
 0x867   :  { %3101 = vmatprep.subr.bf16.mxu1 %v3345_v0 }
 0x868   :  { %3097 = vmatpush3.bf16.msra.mxu0 %v3512_v43 }
 0x869   :  { %3104 = vmatprep.subr.bf16.mxu0 %v3345_v0 }
 0x86a   :  { %3103 = vmatpush3.bf16.msra.mxu1 %v3514_v44 }
 0x86b   :  { %3110 = vmatprep.subr.bf16.mxu1 %v3345_v0 }
 0x930   :  { %v925_v27 = vpop.f32.mrb[8].mxu1 }
 0x931   :  { %v2829_v28 = vpop.f32.mrb[9].mxu1 }
 0x936   :  { %v1000_v30 = vpop.f32.mrb[14].mxu0 }
 0x937   :  { %v1001_v32 = vadd.f32 %v1000_v30, %v925_v27  ;;  %v2840_v34 = vpop.f32.mrb[15].mxu0 }
 0x938   :  { %v1094_v35 = vpop.f32.mrb[10].mxu1 }
 0x939   :  { %v1004_v29 = vadd.f32 %v3577_v61, %v1001_v32  ;;  %v1098_v36 = vadd.f32 %v1094_v35, %v177_v31  ;;  %v2851_v38 = vpop.f32.mrb[11].mxu1 }
 0x93b   :  { %3227 = vtanh.f32 %v1004_v29  ;;  %v1005_v41 = vmul.f32 0.5, %v1004_v29  ;;  %v1099_v42 = vmul.f32 0.5, %v1098_v36 }
 0x93c   :  { %3229 = vtanh.f32 %v1098_v36 }
 0x93d   :  { %3231 = vtanh.f32 %v1005_v41 }
 0x93e   :  { %3233 = vtanh.f32 %v1099_v42 }
 0x945   :  { %v3228_v39 = vpop.eup %3227 }
 0x946   :  { %v3230_v40 = vpop.eup %3229  ;;  %1012 = vrot.lane.b32.xlu0 %v3228_v39, %s3348_s24 }
 0x947   :  { %1106 = vrot.lane.b32.xlu1 %v3230_v40, %s3348_s24  ;;  %v3232_v51 = vpop.eup %3231 }
 0x948   :  { %v3234_v45 = vpop.eup %3233  ;;  %v1007_v46 = vmul.f32 0.5, %v3232_v51 }
 0x949   :  { %v1101_v47 = vmul.f32 0.5, %v3234_v45 }
 0x94a   :  { %v1008_v48 = vadd.f32 0.5, %v1007_v46 }
 0x94b   :  { %v1102_v49 = vadd.f32 0.5, %v1101_v47 }
 0x94c   :  { %v1010_v60 = vmul.f32 %v1008_v48, %v3624_v15 }
 0x94d   :  { %v1104_v62 = vmul.f32 %v1102_v49, %v3628_v18 }
 0x9b8   :  { %v1013_v50 = vpop.permute.xlu0 %1012 }
 0x9b9   :  { %v1107_v55 = vpop.permute.xlu1 %1106  ;;  %v1015_v57 = vmul.f32 %v1013_v50, %v1008_v48 }
 0x9ba   :  { %v1109_v59 = vmul.f32 %v1107_v55, %v1102_v49 }
 0x9bb   :  { %1017 = vrot.lane.b32.xlu0 %v1015_v57, %s3348_s24 }
 0x9bc   :  { %1111 = vrot.lane.b32.xlu1 %v1109_v59, %s3348_s24 }
 0xa2d   :  { %v1018_v63 = vpop.permute.xlu0 %1017 }
 0xa2e   :  { %v1112_v2 = vpop.permute.xlu1 %1111  ;;  %v3665_v3 = vadd.f32 %v1018_v63, %v1010_v60 }
 0xa2f   :  { %v3667_v4 = vadd.f32 %v1112_v2, %v1104_v62 }
 0xa30   :  { %3235 = vtanh.f32 %v3665_v3 }
 0xa31   :  { %3237 = vtanh.f32 %v3667_v4 }
 0xa3a   :  { %v3236_v5 = vpop.eup %3235 }
 0xa3b   :  { %v3238_v52 = vpop.eup %3237  ;;  %1023 = vrot.lane.b32.xlu0 %v3236_v5, %s3348_s24  ;;  %v187_v5 = vadd.f32 %v3550_v53, %v3461_v13 }
 0xa3c   :  { %1117 = vrot.lane.b32.xlu1 %v3238_v52, %s3348_s24 }
 0xaad   :  { %v1024_v6 = vpop.permute.xlu0 %1023 }
 0xaae   :  { %v1118_v7 = vpop.permute.xlu1 %1117  ;;  %v1026_v9 = vmul.f32 %v1024_v6, %v1008_v48 }
 0xaaf   :  { %v1120_v10 = vmul.f32 %v1118_v7, %v1102_v49 }
 0xab0   :  { %1122 = vrot.lane.b32.xlu0 %v1026_v9, %s3349_s0 }
 0xab1   :  { %1197 = vrot.lane.b32.xlu1 %v1120_v10, %s3349_s0 }
 0xb22   :  { %v1123_v11 = vpop.permute.xlu0 %1122 }
 0xb23   :  { %v1198_v14 = vpop.permute.xlu1 %1197  ;;  %2861 = vmatmul.mubr.msk.f32.vlgmr.msra.gmra.mrb[16].mxu0 %vm228_vm2, %v1123_v11 }
 0xb24   :  { %2872 = vmatmul.mubr.msk.f32.vlgmr.msra.gmra.mrb[12].mxu1 %vm228_vm2, %v1198_v14  ;;  %3106 = vmatpush3.bf16.msra.mxu0 %v3435_v8 }
 0xb25   :  { %3107 = vmatprep.subr.bf16.mxu0 %v3345_v0  ;;  %2882 = vmatprep.mubr.msk.f32.mxu0 %vm3346_vm0, %v3347_v1 }
 0xb26   :  { %3112 = vmatpush3.bf16.msra.mxu1 %v3491_v37  ;;  %2893 = vmatprep.mubr.msk.f32.mxu1 %vm3346_vm0, %v3347_v1 }
 0xb27   :  { %3113 = vmatprep.subr.bf16.mxu1 %v3345_v0 }
 0xb28   :  { %3109 = vmatpush3.bf16.msra.mxu0 %v3448_v12 }
 0xb29   :  { %3116 = vmatprep.subr.bf16.mxu0 %v3345_v0 }
 0xb2a   :  { %3115 = vmatpush3.bf16.msra.mxu1 %v3512_v43 }
 0xb2b   :  { %2883 = vmatmul.mubr.msk.f32.vlgmr.msra.gmra.mrb[18].mxu0 %vm228_vm2, %v1198_v14  ;;  %3122 = vmatprep.subr.bf16.mxu1 %v3345_v0 }
 0xb2c   :  { %3118 = vmatpush3.bf16.msra.mxu0 %v3480_v33  ;;  %2904 = vmatprep.mubr.msk.f32.mxu0 %vm3346_vm0, %v3347_v1 }
 0xb2d   :  { %3119 = vmatprep.subr.bf16.mxu0 %v3345_v0 }
 0xb30   :  { %3121 = vmatpush3.bf16.msra.mxu0 %v3514_v44 }
 0xb31   :  { %3128 = vmatprep.subr.bf16.mxu0 %v3345_v0 }
 0xbf6   :  { %v1192_v15 = vpop.f32.mrb[16].mxu0 }
 0xbf7   :  { %v1267_v16 = vpop.f32.mrb[12].mxu1  ;;  %v2862_v17 = vpop.f32.mrb[17].mxu0 }
 0xbf8   :  { %v1268_v18 = vadd.f32 %v1267_v16, %v1192_v15  ;;  %v2873_v19 = vpop.f32.mrb[13].mxu1 }
 0xbfa   :  { %v1271_v20 = vadd.f32 %v3577_v61, %v1268_v18 }
 0xbfc   :  { %3239 = vtanh.f32 %v1271_v20  ;;  %v1272_v27 = vmul.f32 0.5, %v1271_v20 }
 0xbfe   :  { %v1361_v22 = vpop.f32.mrb[18].mxu0 }
 0xbff   :  { %v1365_v23 = vadd.f32 %v1361_v22, %v182_v21  ;;  %v2884_v24 = vpop.f32.mrb[19].mxu0 }
 0xc01   :  { %3241 = vtanh.f32 %v1365_v23  ;;  %v1366_v28 = vmul.f32 0.5, %v1365_v23 }
 0xc02   :  { %3243 = vtanh.f32 %v1272_v27 }
 0xc03   :  { %3245 = vtanh.f32 %v1366_v28 }
 0xc06   :  { %v3240_v25 = vpop.eup %3239 }
 0xc07   :  { %1279 = vrot.lane.b32.xlu0 %v3240_v25, %s3348_s24 }
 0xc0b   :  { %v3242_v26 = vpop.eup %3241 }
 0xc0c   :  { %1373 = vrot.lane.b32.xlu1 %v3242_v26, %s3348_s24  ;;  %v3244_v30 = vpop.eup %3243 }
 0xc0d   :  { %v1274_v31 = vmul.f32 0.5, %v3244_v30  ;;  %v3246_v32 = vpop.eup %3245 }
 0xc0e   :  { %v1368_v54 = vmul.f32 0.5, %v3246_v32 }
 0xc0f   :  { %v1275_v34 = vadd.f32 0.5, %v1274_v31 }
 0xc10   :  { %v1369_v36 = vadd.f32 0.5, %v1368_v54 }
 0xc11   :  { %v1277_v40 = vmul.f32 %v1275_v34, %v3665_v3 }
 0xc12   :  { %v1371_v51 = vmul.f32 %v1369_v36, %v3667_v4 }
 0xc79   :  { %v1280_v35 = vpop.permute.xlu0 %1279 }
 0xc7a   :  { %v1282_v29 = vmul.f32 %v1280_v35, %v1275_v34 }
 0xc7c   :  { %1284 = vrot.lane.b32.xlu0 %v1282_v29, %s3348_s24 }
 0xc7e   :  { %v1374_v38 = vpop.permute.xlu1 %1373 }
 0xc7f   :  { %v1376_v39 = vmul.f32 %v1374_v38, %v1369_v36 }
 0xc81   :  { %1378 = vrot.lane.b32.xlu1 %v1376_v39, %s3348_s24 }
 0xcee   :  { %v1285_v41 = vpop.permute.xlu0 %1284 }
 0xcef   :  { %v3704_v42 = vadd.f32 %v1285_v41, %v1277_v40 }
 0xcf1   :  { %3247 = vtanh.f32 %v3704_v42 }
 0xcf3   :  { %v1379_v45 = vpop.permute.xlu1 %1378 }
 0xcf4   :  { %v3708_v46 = vadd.f32 %v1379_v45, %v1371_v51 }
 0xcf6   :  { %3249 = vtanh.f32 %v3708_v46 }
 0xcfb   :  { %v3248_v47 = vpop.eup %3247 }
 0xcfc   :  { %1290 = vrot.lane.b32.xlu0 %v3248_v47, %s3348_s24  ;;  %v192_v47 = vadd.f32 %v3461_v13, %v3556_v58 }
 0xd00   :  { %v3250_v48 = vpop.eup %3249 }
 0xd01   :  { %1384 = vrot.lane.b32.xlu1 %v3250_v48, %s3348_s24 }
 0xd6e   :  { %v1291_v49 = vpop.permute.xlu0 %1290 }
 0xd6f   :  { %v1293_v50 = vmul.f32 %v1291_v49, %v1275_v34 }
 0xd71   :  { %1389 = vrot.lane.b32.xlu0 %v1293_v50, %s3349_s0 }
 0xd73   :  { %v1385_v55 = vpop.permute.xlu1 %1384 }
 0xd74   :  { %v1387_v57 = vmul.f32 %v1385_v55, %v1369_v36 }
 0xd76   :  { %1464 = vrot.lane.b32.xlu1 %v1387_v57, %s3349_s0 }
 0xde3   :  { %v1390_v59 = vpop.permute.xlu0 %1389 }
 0xde4   :  { %2894 = vmatmul.mubr.msk.f32.vlgmr.msra.gmra.mrb[14].mxu1 %vm228_vm2, %v1390_v59 }
 0xde5   :  { %3124 = vmatpush3.bf16.msra.mxu1 %v3435_v8  ;;  %2915 = vmatprep.mubr.msk.f32.mxu1 %vm3346_vm0, %v3347_v1 }
 0xde6   :  { %3125 = vmatprep.subr.bf16.mxu1 %v3345_v0 }
 0xde8   :  { %v1465_v60 = vpop.permute.xlu1 %1464 }
 0xde9   :  { %3127 = vmatpush3.bf16.msra.mxu1 %v3448_v12  ;;  %2905 = vmatmul.mubr.msk.f32.vlgmr.msra.gmra.mrb[20].mxu0 %vm228_vm2, %v1465_v60 }
 0xdea   :  { %3130 = vmatpush3.bf16.msra.mxu0 %v3491_v37  ;;  %3134 = vmatprep.subr.bf16.mxu1 %v3345_v0 }
 0xdeb   :  { %3131 = vmatprep.subr.bf16.mxu0 %v3345_v0  ;;  %2926 = vmatprep.mubr.msk.f32.mxu0 %vm3346_vm0, %v3347_v1 }
 0xdec   :  { %2916 = vmatmul.mubr.msk.f32.vlgmr.msra.gmra.mrb[16].mxu1 %vm228_vm2, %v1465_v60 }
 0xded   :  { %3136 = vmatpush3.bf16.msra.mxu1 %v3480_v33  ;;  %2937 = vmatprep.mubr.msk.f32.mxu1 %vm3346_vm0, %v3347_v1 }
 0xdee   :  { %3133 = vmatpush3.bf16.msra.mxu0 %v3512_v43  ;;  %3137 = vmatprep.subr.bf16.mxu1 %v3345_v0 }
 0xdef   :  { %3140 = vmatprep.subr.bf16.mxu0 %v3345_v0 }
 0xdf1   :  { %3139 = vmatpush3.bf16.msra.mxu1 %v3514_v44 }
 0xdf2   :  { %3146 = vmatprep.subr.bf16.mxu1 %v3345_v0 }
 0xeb7   :  { %v1459_v62 = vpop.f32.mrb[14].mxu1 }
 0xeb8   :  { %v2895_v63 = vpop.f32.mrb[15].mxu1 }
 0xebc   :  { %v1534_v2 = vpop.f32.mrb[20].mxu0 }
 0xebd   :  { %v1535_v3 = vadd.f32 %v1534_v2, %v1459_v62  ;;  %v2906_v4 = vpop.f32.mrb[21].mxu0 }
 0xebf   :  { %v1538_v52 = vadd.f32 %v3577_v61, %v1535_v3  ;;  %v1628_v6 = vpop.f32.mrb[16].mxu1 }
 0xec0   :  { %v1632_v7 = vadd.f32 %v1628_v6, %v187_v5  ;;  %v2917_v9 = vpop.f32.mrb[17].mxu1 }
 0xec1   :  { %3251 = vtanh.f32 %v1538_v52  ;;  %v1539_v14 = vmul.f32 0.5, %v1538_v52 }
 0xec2   :  { %3253 = vtanh.f32 %v1632_v7  ;;  %v1633_v15 = vmul.f32 0.5, %v1632_v7 }
 0xec3   :  { %3255 = vtanh.f32 %v1539_v14 }
 0xec4   :  { %3257 = vtanh.f32 %v1633_v15 }
 0xecb   :  { %v3252_v10 = vpop.eup %3251 }
 0xecc   :  { %v3254_v11 = vpop.eup %3253  ;;  %1546 = vrot.lane.b32.xlu0 %v3252_v10, %s3348_s24 }
 0xecd   :  { %1640 = vrot.lane.b32.xlu1 %v3254_v11, %s3348_s24  ;;  %v3256_v16 = vpop.eup %3255 }
 0xece   :  { %v3258_v17 = vpop.eup %3257  ;;  %v1541_v53 = vmul.f32 0.5, %v3256_v16 }
 0xecf   :  { %v1635_v18 = vmul.f32 0.5, %v3258_v17 }
 0xed0   :  { %v1542_v19 = vadd.f32 0.5, %v1541_v53 }
 0xed1   :  { %v1636_v20 = vadd.f32 0.5, %v1635_v18 }
 0xed2   :  { %v1544_v25 = vmul.f32 %v1542_v19, %v3704_v42 }
 0xed3   :  { %v1638_v26 = vmul.f32 %v1636_v20, %v3708_v46 }
 0xf3e   :  { %v1547_v21 = vpop.permute.xlu0 %1546 }
 0xf3f   :  { %v1641_v22 = vpop.permute.xlu1 %1640  ;;  %v1549_v23 = vmul.f32 %v1547_v21, %v1542_v19 }
 0xf40   :  { %v1643_v24 = vmul.f32 %v1641_v22, %v1636_v20 }
 0xf41   :  { %1551 = vrot.lane.b32.xlu0 %v1549_v23, %s3348_s24 }
 0xf42   :  { %1645 = vrot.lane.b32.xlu1 %v1643_v24, %s3348_s24 }
 0xfb3   :  { %v1552_v27 = vpop.permute.xlu0 %1551 }
 0xfb4   :  { %v1646_v28 = vpop.permute.xlu1 %1645  ;;  %v3745_v30 = vadd.f32 %v1552_v27, %v1544_v25 }
 0xfb5   :  { %v3747_v31 = vadd.f32 %v1646_v28, %v1638_v26 }
 0xfb6   :  { %3259 = vtanh.f32 %v3745_v30 }
 0xfb7   :  { %3261 = vtanh.f32 %v3747_v31 }
 0xfc0   :  { %v3260_v32 = vpop.eup %3259 }
 0xfc1   :  { %v3262_v34 = vpop.eup %3261  ;;  %1557 = vrot.lane.b32.xlu0 %v3260_v32, %s3348_s24 }
 0xfc2   :  { %1651 = vrot.lane.b32.xlu1 %v3262_v34, %s3348_s24 }
0x1033   :  { %v1558_v35 = vpop.permute.xlu0 %1557 }
0x1034   :  { %v1652_v54 = vpop.permute.xlu1 %1651  ;;  %v1560_v29 = vmul.f32 %v1558_v35, %v1542_v19 }
0x1035   :  { %v1654_v36 = vmul.f32 %v1652_v54, %v1636_v20 }
0x1036   :  { %1656 = vrot.lane.b32.xlu0 %v1560_v29, %s3349_s0 }
0x1037   :  { %1731 = vrot.lane.b32.xlu1 %v1654_v36, %s3349_s0 }
0x10a8   :  { %v1657_v38 = vpop.permute.xlu0 %1656 }
0x10a9   :  { %v1732_v39 = vpop.permute.xlu1 %1731  ;;  %2927 = vmatmul.mubr.msk.f32.vlgmr.msra.gmra.mrb[22].mxu0 %vm228_vm2, %v1657_v38 }
0x10aa   :  { %2938 = vmatmul.mubr.msk.f32.vlgmr.msra.gmra.mrb[18].mxu1 %vm228_vm2, %v1732_v39  ;;  %3142 = vmatpush3.bf16.msra.mxu0 %v3435_v8 }
0x10ab   :  { %3143 = vmatprep.subr.bf16.mxu0 %v3345_v0  ;;  %2948 = vmatprep.mubr.msk.f32.mxu0 %vm3346_vm0, %v3347_v1 }
0x10ac   :  { %3148 = vmatpush3.bf16.msra.mxu1 %v3491_v37  ;;  %2959 = vmatprep.mubr.msk.f32.mxu1 %vm3346_vm0, %v3347_v1 }
0x10ad   :  { %3149 = vmatprep.subr.bf16.mxu1 %v3345_v0 }
0x10ae   :  { %3145 = vmatpush3.bf16.msra.mxu0 %v3448_v12 }
0x10af   :  { %3152 = vmatprep.subr.bf16.mxu0 %v3345_v0 }
0x10b0   :  { %3151 = vmatpush3.bf16.msra.mxu1 %v3512_v43 }
0x10b1   :  { %2949 = vmatmul.mubr.msk.f32.vlgmr.msra.gmra.mrb[24].mxu0 %vm228_vm2, %v1732_v39  ;;  %3158 = vmatprep.subr.bf16.mxu1 %v3345_v0 }
0x10b2   :  { %3154 = vmatpush3.bf16.msra.mxu0 %v3480_v33  ;;  %2970 = vmatprep.mubr.msk.f32.mxu0 %vm3346_vm0, %v3347_v1 }
0x10b3   :  { %3155 = vmatprep.subr.bf16.mxu0 %v3345_v0 }
0x10b6   :  { %3157 = vmatpush3.bf16.msra.mxu0 %v3514_v44 }
0x10b7   :  { %3164 = vmatprep.subr.bf16.mxu0 %v3345_v0 }
0x117c   :  { %v1726_v40 = vpop.f32.mrb[22].mxu0 }
0x117d   :  { %v1801_v41 = vpop.f32.mrb[18].mxu1  ;;  %v2928_v42 = vpop.f32.mrb[23].mxu0 }
0x117e   :  { %v1802_v51 = vadd.f32 %v1801_v41, %v1726_v40  ;;  %v2939_v45 = vpop.f32.mrb[19].mxu1 }
0x1180   :  { %v1805_v46 = vadd.f32 %v3577_v61, %v1802_v51 }
0x1182   :  { %3263 = vtanh.f32 %v1805_v46  ;;  %v1806_v59 = vmul.f32 0.5, %v1805_v46 }
0x1184   :  { %v1895_v48 = vpop.f32.mrb[24].mxu0 }
0x1185   :  { %v1899_v49 = vadd.f32 %v1895_v48, %v192_v47  ;;  %v2950_v50 = vpop.f32.mrb[25].mxu0 }
0x1187   :  { %3265 = vtanh.f32 %v1899_v49  ;;  %v1900_v60 = vmul.f32 0.5, %v1899_v49 }
0x1188   :  { %3267 = vtanh.f32 %v1806_v59 }
0x1189   :  { %3269 = vtanh.f32 %v1900_v60 }
0x118c   :  { %v3264_v55 = vpop.eup %3263 }
0x118d   :  { %1813 = vrot.lane.b32.xlu0 %v3264_v55, %s3348_s24 }
0x1191   :  { %v3266_v57 = vpop.eup %3265 }
0x1192   :  { %1907 = vrot.lane.b32.xlu1 %v3266_v57, %s3348_s24  ;;  %v3268_v62 = vpop.eup %3267 }
0x1193   :  { %v1808_v63 = vmul.f32 0.5, %v3268_v62  ;;  %v3270_v2 = vpop.eup %3269 }
0x1194   :  { %v1902_v13 = vmul.f32 0.5, %v3270_v2 }
0x1195   :  { %v1809_v3 = vadd.f32 0.5, %v1808_v63 }
0x1196   :  { %v1903_v5 = vadd.f32 0.5, %v1902_v13 }
0x1197   :  { %v1811_v7 = vmul.f32 %v1809_v3, %v3745_v30 }
0x1198   :  { %v1905_v11 = vmul.f32 %v1903_v5, %v3747_v31 }
0x11ff   :  { %v1814_v4 = vpop.permute.xlu0 %1813 }
0x1200   :  { %v1816_v58 = vmul.f32 %v1814_v4, %v1809_v3 }
0x1202   :  { %1818 = vrot.lane.b32.xlu0 %v1816_v58, %s3348_s24 }
0x1204   :  { %v1908_v52 = vpop.permute.xlu1 %1907 }
0x1205   :  { %v1910_v6 = vmul.f32 %v1908_v52, %v1903_v5 }
0x1207   :  { %1912 = vrot.lane.b32.xlu1 %v1910_v6, %s3348_s24 }
0x1274   :  { %v1819_v9 = vpop.permute.xlu0 %1818 }
0x1275   :  { %v3784_v10 = vadd.f32 %v1819_v9, %v1811_v7 }
0x1277   :  { %3271 = vtanh.f32 %v3784_v10 }
0x1279   :  { %v1913_v14 = vpop.permute.xlu1 %1912 }
0x127a   :  { %v3788_v15 = vadd.f32 %v1913_v14, %v1905_v11 }
0x127c   :  { %3273 = vtanh.f32 %v3788_v15 }
0x1281   :  { %v3272_v16 = vpop.eup %3271 }
0x1282   :  { %1824 = vrot.lane.b32.xlu0 %v3272_v16, %s3348_s24 }
0x1286   :  { %v3274_v17 = vpop.eup %3273 }
0x1287   :  { %1918 = vrot.lane.b32.xlu1 %v3274_v17, %s3348_s24  ;;  %v2363_v17 = vld [vmem:[%s3895_s7 + $0x8] sm:$0xff] }
0x12f4   :  { %v1825_v53 = vpop.permute.xlu0 %1824 }
0x12f5   :  { %v1827_v18 = vmul.f32 %v1825_v53, %v1809_v3  ;;  %v2364_v53 = vld [vmem:[%s3895_s7 + $0x10] sm:$0xff] }
0x12f7   :  { %1923 = vrot.lane.b32.xlu0 %v1827_v18, %s3349_s0 }
0x12f9   :  { %v1919_v19 = vpop.permute.xlu1 %1918 }
0x12fa   :  { %v1921_v20 = vmul.f32 %v1919_v19, %v1903_v5  ;;  %v2365_v19 = vld [vmem:[%s3895_s7 + $0x18] sm:$0xff] }
0x12fc   :  { %1998 = vrot.lane.b32.xlu1 %v1921_v20, %s3349_s0  ;;  %v3180_v20 = vpack.c.bf16 %v2365_v19, %v2364_v53 }
0x1369   :  { %v1924_v21 = vpop.permute.xlu0 %1923 }
0x136a   :  { %2960 = vmatmul.mubr.msk.f32.vlgmr.msra.gmra.mrb[20].mxu1 %vm228_vm2, %v1924_v21 }
0x136b   :  { %3160 = vmatpush3.bf16.msra.mxu1 %v3435_v8  ;;  %2981 = vmatprep.mubr.msk.f32.mxu1 %vm3346_vm0, %v3347_v1 }
0x136c   :  { %3161 = vmatprep.subr.bf16.mxu1 %v3345_v0 }
0x136e   :  { %v1999_v22 = vpop.permute.xlu1 %1998 }
0x136f   :  { %3163 = vmatpush3.bf16.msra.mxu1 %v3448_v12  ;;  %2971 = vmatmul.mubr.msk.f32.vlgmr.msra.gmra.mrb[26].mxu0 %vm228_vm2, %v1999_v22 }
0x1370   :  { %3170 = vmatprep.subr.bf16.mxu1 %v3345_v0  ;;  %3166 = vmatpush3.bf16.msra.mxu0 %v3491_v37 }
0x1371   :  { %3167 = vmatprep.subr.bf16.mxu0 %v3345_v0  ;;  %2992 = vmatprep.mubr.msk.f32.mxu0 %vm3346_vm0, %v3347_v1 }
0x1372   :  { %2982 = vmatmul.mubr.msk.f32.vlgmr.msra.gmra.mrb[22].mxu1 %vm228_vm2, %v1999_v22  ;;  %v2449_v22 = vld [vmem:[%s3897_s9] sm:$0xff] }
0x1373   :  { %3172 = vmatpush3.bf16.msra.mxu1 %v3480_v33  ;;  %3003 = vmatprep.mubr.msk.f32.mxu1 %vm3346_vm0, %v3347_v1  ;;  %v3293_v33 = vld [vmem:[%s3890_s2] ss:$0 sm:$0xff] }
0x1374   :  { %3173 = vmatprep.subr.bf16.mxu1 %v3345_v0  ;;  %3169 = vmatpush3.bf16.msra.mxu0 %v3512_v43  ;;  %v197_v25 = vadd.f32 %v3293_v33, %v3554_v56  ;;  %v2451_v33 = vld [vmem:[%s3897_s9 + $0x10] sm:$0xff] }
0x1375   :  { %3176 = vmatprep.subr.bf16.mxu0 %v3345_v0 }
0x1377   :  { %3175 = vmatpush3.bf16.msra.mxu1 %v3514_v44 }
0x1378   :  { %3182 = vmatprep.subr.bf16.mxu1 %v3345_v0 }
0x143d   :  { %v1993_v8 = vpop.f32.mrb[20].mxu1 }
0x143e   :  { %v2961_v12 = vpop.f32.mrb[21].mxu1 }
0x1442   :  { %v2068_v37 = vpop.f32.mrb[26].mxu0 }
0x1443   :  { %v2069_v23 = vadd.f32 %v2068_v37, %v1993_v8  ;;  %v2972_v24 = vpop.f32.mrb[27].mxu0  ;;  %v2450_v8 = vld [vmem:[%s3897_s9 + $0x8] sm:$0xff] }
0x1444   :  { %v3183_v12 = vpack.c.bf16 %v2450_v8, %v2449_v22 }
0x1445   :  { %v2072_v26 = vadd.f32 %v3577_v61, %v2069_v23  ;;  %v2162_v43 = vpop.f32.mrb[22].mxu1 }
0x1446   :  { %v2166_v27 = vadd.f32 %v2162_v43, %v197_v25  ;;  %v2983_v28 = vpop.f32.mrb[23].mxu1  ;;  %v2452_v25 = vld [vmem:[%s3897_s9 + $0x18] sm:$0xff]  ;;  %s3316_s9 = scalar_lea.vmem %s2542_s30, 128 }
0x1447   :  { %3275 = vtanh.f32 %v2072_v26  ;;  %v2073_v31 = vmul.f32 0.5, %v2072_v26  ;;  %v3186_v26 = vpack.c.bf16 %v2452_v25, %v2451_v33  ;;  %p3317_p8 = scmp.ne.s32.totalorder %s2542_s30, %s3316_s9  ;;  %p3322_p10 = scmp.lt.s32.totalorder %s3316_s9, %s3316_s9 }
0x1448   :  { %3277 = vtanh.f32 %v2166_v27  ;;  %v2167_v32 = vmul.f32 0.5, %v2166_v27 }
0x1449   :  { %3279 = vtanh.f32 %v2073_v31  ;;  %p3323_p11 = por %p3322_p10, %p3321_p9 }
0x144a   :  { %3281 = vtanh.f32 %v2167_v32 }
0x144b   :  { %p3324_p12 = pnand %p3323_p11, %p3317_p8 }
0x1451   :  { %v3276_v44 = vpop.eup %3275 }
0x1452   :  { %v3278_v30 = vpop.eup %3277  ;;  %2080 = vrot.lane.b32.xlu0 %v3276_v44, %s3348_s24 }
0x1453   :  { %2174 = vrot.lane.b32.xlu1 %v3278_v30, %s3348_s24  ;;  %v3280_v34 = vpop.eup %3279  ;;  %v2584_v30 = vld [vmem:[%s3898_s10] ss:$0 sm:$0xff] }
0x1454   :  { %v3282_v35 = vpop.eup %3281  ;;  %v2075_v56 = vmul.f32 0.5, %v3280_v34 }
0x1455   :  { %v2169_v54 = vmul.f32 0.5, %v3282_v35 }
0x1456   :  { %v2076_v29 = vadd.f32 0.5, %v2075_v56 }
0x1457   :  { %v2170_v36 = vadd.f32 0.5, %v2169_v54 }
0x1458   :  { %v2078_v42 = vmul.f32 %v2076_v29, %v3784_v10 }
0x1459   :  { %v2172_v51 = vmul.f32 %v2170_v36, %v3788_v15 }
0x14c4   :  { %v2081_v38 = vpop.permute.xlu0 %2080 }
0x14c5   :  { %v2175_v39 = vpop.permute.xlu1 %2174  ;;  %v2083_v40 = vmul.f32 %v2081_v38, %v2076_v29 }
0x14c6   :  { %v2177_v41 = vmul.f32 %v2175_v39, %v2170_v36 }
0x14c7   :  { %2085 = vrot.lane.b32.xlu0 %v2083_v40, %s3348_s24 }
0x14c8   :  { %2179 = vrot.lane.b32.xlu1 %v2177_v41, %s3348_s24 }
0x1539   :  { %v2086_v45 = vpop.permute.xlu0 %2085 }
0x153a   :  { %v2180_v46 = vpop.permute.xlu1 %2179  ;;  %v2088_v47 = vadd.f32 %v2086_v45, %v2078_v42 }
0x153b   :  { %v2182_v48 = vadd.f32 %v2180_v46, %v2172_v51 }
0x153c   :  { %3283 = vtanh.f32 %v2088_v47 }
0x153d   :  { %3285 = vtanh.f32 %v2182_v48 }
0x1546   :  { %v3284_v49 = vpop.eup %3283 }
0x1547   :  { %v3286_v50 = vpop.eup %3285  ;;  %2091 = vrot.lane.b32.xlu0 %v3284_v49, %s3348_s24 }
0x1548   :  { %2185 = vrot.lane.b32.xlu1 %v3286_v50, %s3348_s24 }
0x15b9   :  { %v2092_v55 = vpop.permute.xlu0 %2091 }
0x15ba   :  { %v2186_v57 = vpop.permute.xlu1 %2185  ;;  %v2094_v59 = vmul.f32 %v2092_v55, %v2076_v29 }
0x15bb   :  { %v2188_v60 = vmul.f32 %v2186_v57, %v2170_v36 }
0x15bc   :  { %2190 = vrot.lane.b32.xlu0 %v2094_v59, %s3349_s0 }
0x15bd   :  { %2265 = vrot.lane.b32.xlu1 %v2188_v60, %s3349_s0 }
0x162e   :  { %v2191_v62 = vpop.permute.xlu0 %2190 }
0x162f   :  { %v2266_v63 = vpop.permute.xlu1 %2265  ;;  %2993 = vmatmul.mubr.msk.f32.vlgmr.msra.gmra.mrb[28].mxu0 %vm228_vm2, %v2191_v62 }
0x1630   :  { %3004 = vmatmul.mubr.msk.f32.vlgmr.msra.gmra.mrb[24].mxu1 %vm228_vm2, %v2266_v63  ;;  %3014 = vmatprep.mubr.msk.f32.mxu0 %vm3346_vm0, %v3347_v1 }
0x1631   :  { %3025 = vmatprep.mubr.msk.f32.mxu1 %vm3346_vm0, %v3347_v1  ;;  %3184 = vmatpush3.bf16.msra.mxu1 %v3183_v12 }
0x1632   :  { %3185 = vmatprep.subr.bf16.mxu1 %v3345_v0 }
0x1635   :  { %3187 = vmatpush3.bf16.msra.mxu1 %v3186_v26 }
0x1702   :  { %v2260_v2 = vpop.f32.mrb[28].mxu0 }
0x1703   :  { %v2335_v3 = vpop.f32.mrb[24].mxu1  ;;  %v2994_v4 = vpop.f32.mrb[29].mxu0 }
0x1704   :  { %v2336_v13 = vadd.f32 %v2335_v3, %v2260_v2  ;;  %v3005_v58 = vpop.f32.mrb[25].mxu1 }
0x1706   :  { %v2339_v5 = vadd.f32 %v3577_v61, %v2336_v13  ;;  %v2362_v61 = vld [vmem:[%s3895_s7] sm:$0xff] }
0x1707   :  { %v3177_v18 = vpack.c.bf16 %v2363_v17, %v2362_v61 }
0x1708   :  { %3287 = vtanh.f32 %v2339_v5  ;;  %v2340_v6 = vmul.f32 0.5, %v2339_v5 }
0x1709   :  { %3178 = vmatpush3.bf16.msra.mxu0 %v3177_v18 }
0x170a   :  { %3289 = vtanh.f32 %v2340_v6  ;;  %3179 = vmatprep.subr.bf16.mxu0 %v3345_v0  ;;  %v2582_v0 = vld [vmem:[%s3896_s8] ss:$0 sm:$0xff] }
0x170d   :  { %3181 = vmatpush3.bf16.msra.mxu0 %v3180_v20 }
0x1712   :  { %v3288_v52 = vpop.eup %3287 }
0x1713   :  { %2347 = vrot.lane.b32.xlu0 %v3288_v52, %s3348_s24 }
0x1714   :  { %v3290_v7 = vpop.eup %3289 }
0x1715   :  { %v2342_v9 = vmul.f32 0.5, %v3290_v7 }
0x1717   :  { %v2343_v10 = vadd.f32 0.5, %v2342_v9 }
0x1719   :  { %v2345_v1 = vmul.f32 %v2343_v10, %v2088_v47 }
0x1785   :  { %v2348_v11 = vpop.permute.xlu0 %2347 }
0x1786   :  { %v2350_v14 = vmul.f32 %v2348_v11, %v2343_v10 }
0x1788   :  { %2352 = vrot.lane.b32.xlu1 %v2350_v14, %s3348_s24 }
0x17fa   :  { %v2353_v15 = vpop.permute.xlu1 %2352 }
0x17fb   :  { %v2355_v16 = vadd.f32 %v2353_v15, %v2345_v1 }
0x17fd   :  { %3291 = vtanh.f32 %v2355_v16 }
0x1807   :  { %v3292_v21 = vpop.eup %3291 }
0x1808   :  { %2358 = vrot.lane.b32.xlu0 %v3292_v21, %s3348_s24 }
0x187a   :  { %v2359_v37 = vpop.permute.xlu0 %2358 }
0x187b   :  { %v2361_v23 = vmul.f32 %v2359_v37, %v2343_v10 }
0x187d   :  { %2374 = vrot.lane.b32.xlu1 %v2361_v23, %s3349_s0 }
0x18ef   :  { %v2375_v24 = vpop.permute.xlu1 %2374 }
0x18f0   :  { %3015 = vmatmul.mubr.msk.f32.vlgmr.msra.gmra.mrb[30].mxu0 %vm228_vm2, %v2375_v24 }
0x19c3   :  { %v2444_v43 = vpop.f32.mrb[30].mxu0 }
0x19c4   :  { %v2445_v27 = vadd.f32 %v2582_v0, %v2444_v43  ;;  %v3016_v28 = vpop.f32.mrb[31].mxu0 }
0x19c6   :  { %v2448_v44 = vmax.f32 %v2445_v27, 0.0 }
0x19c8   :  { %3026 = vmatmul.mubr.msk.f32.vlgmr.msra.gmra.mrb[26].mxu1 %vm228_vm2, %v2448_v44 }
0x1a9b   :  { %v2529_v31 = vpop.f32.mrb[26].mxu1 }
0x1a9c   :  { %v2530_v32 = vadd.f32 %v2584_v30, %v2529_v31  ;;  %v3027_v34 = vpop.f32.mrb[27].mxu1 }
0x1a9e   :  { %2534 = vst.msk [vmem:[#allocation6] sm:$0xff] %vm2533_vm3, %v2530_v32 }
0x1a9f   :  { %3327 = shalt.err (!%p3324_p12)
}
0x1aa0   :  { %s3328_s12 = scalar_lea.hbm %s3899_s11, 128 }
0x1aa1   :  { %p3329_p13 = scmp.ne.s32.totalorder %s3899_s11, %s3328_s12  ;;  %p3332_p0 = scmp.lt.u32.totalorder %s3328_s12, %s3899_s11 }
0x1aa3   :  { %p3334_p1 = pnand %p3332_p0, %p3329_p13 }
0x1aa5   :  { %3337 = shalt.err (!%p3334_p1)
}
0x1aa6   :  { %2544 = dma.vmem_to_hbm [thread:$0]  %s2542_s30, 128, %s3899_s11, [#allocation5]  }
0x1aa7   :  { %3340 = dma.done.wait [#allocation5], 128  }
0x1aa8   :  { %3341 = vsyncadd [#allocation5], 4294967168 }
0x1aa9   :  { %2548 = vsyncpa [#allocation4], 1 }
0x1aaa   :  { %2549 = vsyncpa [#allocation5], 1 }

</bundles_post_ra>
